<compile_context>
chip_gen: v7x
topology: tpu7x:2x2x1
jax: 0.10.0
libtpu: 0.0.40
codegen_flags: <defaults>
</compile_context>

<pallas_src>
import math

import jax
import jax.numpy as jnp
from jax.experimental import pallas as pl
from jax.experimental.pallas import tpu as pltpu

# ----------------------------- config (small, synthetic) --------------------
BATCH = 2
SEQ = 8
HIDDEN = 32
N_HEADS = 4
HEAD_DIM = HIDDEN // N_HEADS
INTER = 64
N_LAYERS = 2
VOCAB = 100
TYPE_VOCAB = 2
MAX_POS = 64
LN_EPS = 1e-12


# ----------------------------- in-kernel helpers -----------------------------
def _layer_norm(x, gamma, beta):
    mean = jnp.mean(x, axis=-1, keepdims=True)
    xc = x - mean
    var = jnp.mean(xc * xc, axis=-1, keepdims=True)
    return xc * jax.lax.rsqrt(var + LN_EPS) * gamma + beta


def _erf(x):
    # Abramowitz & Stegun 7.1.26 rational approximation, |error| < 1.5e-7.
    # Gives exact-erf-GELU semantics (to f32 noise) without relying on a
    # lax.erf Mosaic lowering at these tiny shapes.
    p = 0.3275911
    a1, a2, a3, a4, a5 = (0.254829592, -0.284496736, 1.421413741,
                          -1.453152027, 1.061405429)
    sgn = jnp.where(x < 0.0, -1.0, 1.0)
    z = jnp.abs(x)
    t = 1.0 / (1.0 + p * z)
    poly = ((((a5 * t + a4) * t + a3) * t + a2) * t + a1) * t
    return sgn * (1.0 - poly * jnp.exp(-z * z))


def _gelu(x):
    return 0.5 * x * (1.0 + _erf(x * 0.7071067811865476))


# ----------------------------- fused encoder kernel --------------------------
def _transformer_layer(x, mask2d, wqkv, bqkv, wo, bo,
                       ln1g, ln1b, w1, b1, w2, b2, ln2g, ln2b):
    """One encoder layer over the full [M, H] activation (batched attention)."""
    # Single fused QKV projection (scale already folded into Wq/bq).
    qkv = jnp.dot(x, wqkv, preferred_element_type=jnp.float32) + bqkv    # [M,3H]

    # Per-head attention from lane slices; scores are block-diagonal over the
    # batch via mask2d.  NOTE: at real N_HEADS (12+) convert this static
    # Python loop to lax.fori_loop(..., unroll=True) to bound vreg live ranges.
    ctx_heads = []
    for h in range(N_HEADS):
        lo = h * HEAD_DIM
        q = qkv[:, lo:lo + HEAD_DIM]
        k = qkv[:, HIDDEN + lo:HIDDEN + lo + HEAD_DIM]
        v = qkv[:, 2 * HIDDEN + lo:2 * HIDDEN + lo + HEAD_DIM]
        s = jax.lax.dot_general(q, k, (((1,), (1,)), ((), ())),
                                preferred_element_type=jnp.float32)      # [M,M]
        s = s + mask2d
        s = s - jnp.max(s, axis=-1, keepdims=True)
        p = jnp.exp(s)
        p = p / jnp.sum(p, axis=-1, keepdims=True)
        ctx_heads.append(jnp.dot(p, v, preferred_element_type=jnp.float32))

    # Lane-concat head contexts -> ONE output-projection matmul.
    ctx = jnp.concatenate(ctx_heads, axis=-1)                            # [M,H]
    attn = jnp.dot(ctx, wo, preferred_element_type=jnp.float32) + bo

    x1 = _layer_norm(attn + x, ln1g, ln1b)
    ffh = _gelu(jnp.dot(x1, w1, preferred_element_type=jnp.float32) + b1)
    ff = jnp.dot(ffh, w2, preferred_element_type=jnp.float32) + b2
    return _layer_norm(ff + x1, ln2g, ln2b)


def _encoder_step(x_ref, mask_ref, eg_ref, eb_ref,
                  wqkv_ref, bqkv_ref, wo_ref, bo_ref,
                  ln1g_ref, ln1b_ref, w1_ref, b1_ref,
                  w2_ref, b2_ref, ln2g_ref, ln2b_ref, x_scr):
    """One grid step == one transformer layer; x_scr carries the activation."""
    @pl.when(pl.program_id(0) == 0)
    def _():
        # Embedding LayerNorm (no residual) — runs once; from here on the
        # activation stays resident in the VMEM scratch.
        x_scr[...] = _layer_norm(x_ref[...], eg_ref[...], eb_ref[...])

    x_scr[...] = _transformer_layer(
        x_scr[...], mask_ref[...],
        wqkv_ref[0], bqkv_ref[0], wo_ref[0], bo_ref[0],
        ln1g_ref[0], ln1b_ref[0], w1_ref[0], b1_ref[0],
        w2_ref[0], b2_ref[0], ln2g_ref[0], ln2b_ref[0])


def _mrc_logits(x, wse, bse):
    # Merged start/end heads: one [M,H]x[H,4] matmul.
    return jnp.dot(x, wse, preferred_element_type=jnp.float32) + bse


def _encoder_logits_kernel(x_ref, mask_ref, eg_ref, eb_ref,
                           wqkv_ref, bqkv_ref, wo_ref, bo_ref,
                           ln1g_ref, ln1b_ref, w1_ref, b1_ref,
                           w2_ref, b2_ref, ln2g_ref, ln2b_ref,
                           wse_ref, bse_ref, logits_ref, x_scr):
    _encoder_step(x_ref, mask_ref, eg_ref, eb_ref,
                  wqkv_ref, bqkv_ref, wo_ref, bo_ref,
                  ln1g_ref, ln1b_ref, w1_ref, b1_ref,
                  w2_ref, b2_ref, ln2g_ref, ln2b_ref, x_scr)

    @pl.when(pl.program_id(0) == pl.num_programs(0) - 1)
    def _():
        # TODO(synk): on v5e pad this [M,4] output to a 128-wide lane-dense
        # slab if the masked partial store ever shows up in a profile.
        logits_ref[...] = _mrc_logits(
            x_scr[...], wse_ref[...], bse_ref[...]).astype(logits_ref.dtype)


def _encoder_loss_kernel(x_ref, mask_ref, eg_ref, eb_ref,
                         wqkv_ref, bqkv_ref, wo_ref, bo_ref,
                         ln1g_ref, ln1b_ref, w1_ref, b1_ref,
                         w2_ref, b2_ref, ln2g_ref, ln2b_ref,
                         wse_ref, bse_ref, sl_ref, el_ref,
                         loss_ref, x_scr):
    _encoder_step(x_ref, mask_ref, eg_ref, eb_ref,
                  wqkv_ref, bqkv_ref, wo_ref, bo_ref,
                  ln1g_ref, ln1b_ref, w1_ref, b1_ref,
                  w2_ref, b2_ref, ln2g_ref, ln2b_ref, x_scr)

    @pl.when(pl.program_id(0) == pl.num_programs(0) - 1)
    def _():
        logits = _mrc_logits(x_scr[...], wse_ref[...], bse_ref[...])     # [M,4]
        m, c4 = logits.shape
        cls = jax.lax.broadcasted_iota(jnp.int32, (m, c4), 1)            # 0..3
        is_start = cls < 2
        neg = -1e30

        start_masked = jnp.where(is_start, logits, neg)
        end_masked = jnp.where(is_start, neg, logits)
        m_s = jnp.max(start_masked, axis=-1, keepdims=True)
        m_e = jnp.max(end_masked, axis=-1, keepdims=True)
        lse_s = jnp.log(jnp.sum(jnp.exp(start_masked - m_s), axis=-1,
                                keepdims=True)) + m_s
        lse_e = jnp.log(jnp.sum(jnp.exp(end_masked - m_e), axis=-1,
                                keepdims=True)) + m_e

        pick_s = jnp.sum(jnp.where((cls == sl_ref[...]) & is_start,
                                   logits, 0.0), axis=-1, keepdims=True)
        pick_e = jnp.sum(jnp.where((cls - 2 == el_ref[...]) & (~is_start),
                                   logits, 0.0), axis=-1, keepdims=True)

        start_loss = jnp.mean(lse_s - pick_s)
        end_loss = jnp.mean(lse_e - pick_e)
        # Matches the reference: total_loss = (start_loss + end_loss) / 2
        loss_ref[0, 0] = 0.5 * (start_loss + end_loss)


# ----------------------------- parameters -----------------------------------
def init_params(key):
    keys = iter(jax.random.split(key, 256))

    def nrm(shape):
        return jax.random.normal(next(keys), shape, jnp.float32) * 0.02

    ones_h = jnp.ones((HIDDEN,), jnp.float32)
    zeros_h = jnp.zeros((HIDDEN,), jnp.float32)
    params = {
        "word_emb": nrm((VOCAB, HIDDEN)),
        "pos_emb": nrm((MAX_POS, HIDDEN)),
        "type_emb": nrm((TYPE_VOCAB, HIDDEN)),
        "emb_ln_g": ones_h, "emb_ln_b": zeros_h,
        "start_w": nrm((HIDDEN, 2)), "start_b": jnp.zeros((2,), jnp.float32),
        "end_w": nrm((HIDDEN, 2)), "end_b": jnp.zeros((2,), jnp.float32),
        "layers": [],
    }
    for _ in range(N_LAYERS):
        params["layers"].append({
            "wq": nrm((HIDDEN, HIDDEN)), "bq": zeros_h,
            "wk": nrm((HIDDEN, HIDDEN)), "bk": zeros_h,
            "wv": nrm((HIDDEN, HIDDEN)), "bv": zeros_h,
            "wo": nrm((HIDDEN, HIDDEN)), "bo": zeros_h,
            "ln1_g": ones_h, "ln1_b": zeros_h,
            "w1": nrm((HIDDEN, INTER)), "b1": jnp.zeros((INTER,), jnp.float32),
            "w2": nrm((INTER, HIDDEN)), "b2": zeros_h,
            "ln2_g": ones_h, "ln2_b": zeros_h,
        })
    return params


def _pack_encoder_params(params):
    """Stack per-layer params on a leading layer axis.  Q/K/V weights are
    concatenated on the output (lane) axis -> ONE QKV matmul per layer;
    1/sqrt(head_dim) is folded into Wq/bq so the kernel never scales scores."""
    scale = 1.0 / math.sqrt(HEAD_DIM)
    keys = ["wqkv", "bqkv", "wo", "bo", "ln1g", "ln1b",
            "w1", "b1", "w2", "b2", "ln2g", "ln2b"]
    stacks = {k: [] for k in keys}
    for lp in params["layers"]:
        stacks["wqkv"].append(jnp.concatenate(
            [lp["wq"] * scale, lp["wk"], lp["wv"]], axis=1))             # [H,3H]
        stacks["bqkv"].append(jnp.concatenate(
            [lp["bq"] * scale, lp["bk"], lp["bv"]]).reshape(1, 3 * HIDDEN))
        stacks["wo"].append(lp["wo"])                                    # [H,H]
        stacks["bo"].append(lp["bo"].reshape(1, HIDDEN))
        stacks["ln1g"].append(lp["ln1_g"].reshape(1, HIDDEN))
        stacks["ln1b"].append(lp["ln1_b"].reshape(1, HIDDEN))
        stacks["w1"].append(lp["w1"])
        stacks["b1"].append(lp["b1"].reshape(1, INTER))
        stacks["w2"].append(lp["w2"])
        stacks["b2"].append(lp["b2"].reshape(1, HIDDEN))
        stacks["ln2g"].append(lp["ln2_g"].reshape(1, HIDDEN))
        stacks["ln2b"].append(lp["ln2_b"].reshape(1, HIDDEN))
    return {k: jnp.stack(v, axis=0) for k, v in stacks.items()}


# ----------------------------- forward ---------------------------------------
def bert_mrc_ner_forward(params, input_ids, token_type_ids=None,
                         attention_mask=None, start_positions=None,
                         end_positions=None):
    B, S = input_ids.shape
    M = B * S
    if token_type_ids is None:
        token_type_ids = jnp.zeros_like(input_ids)
    if attention_mask is None:
        attention_mask = jnp.ones_like(input_ids)

    # ---- embeddings (gathers are JAX glue; the LN runs inside the kernel) ---
    emb = (params["word_emb"][input_ids]
           + params["pos_emb"][:S][None, :, :]
           + params["type_emb"][token_type_ids])
    x_emb = emb.reshape(M, HIDDEN).astype(jnp.float32)

    # ---- block-diagonal additive mask [M, M]: lets the kernel batch the
    # attention over B.  In-batch keys use BERT's (1-mask)*-1e4; cross-batch
    # entries get a huge negative so they vanish in the softmax.
    key_mask = ((1.0 - attention_mask.astype(jnp.float32)) * -10000.0
                ).reshape(M)
    bidx = jnp.arange(M, dtype=jnp.int32) // S
    same_batch = bidx[:, None] == bidx[None, :]
    mask2d = jnp.where(same_batch, key_mask[None, :], jnp.float32(-1e9))

    packed = _pack_encoder_params(params)
    # Merged start/end head: one lane-denser [H, 4] projection.
    wse = jnp.concatenate([params["start_w"], params["end_w"]], axis=1)
    bse = jnp.concatenate([params["start_b"], params["end_b"]]).reshape(1, 4)

    operands = (x_emb, mask2d,
                params["emb_ln_g"].reshape(1, HIDDEN),
                params["emb_ln_b"].reshape(1, HIDDEN),
                packed["wqkv"], packed["bqkv"], packed["wo"], packed["bo"],
                packed["ln1g"], packed["ln1b"], packed["w1"], packed["b1"],
                packed["w2"], packed["b2"], packed["ln2g"], packed["ln2b"],
                wse, bse)

    c2 = lambda l: (0, 0)
    pl3 = lambda l: (l, 0, 0)
    base_in_specs = [
        pl.BlockSpec((M, HIDDEN), c2),                   # summed embeddings
        pl.BlockSpec((M, M), c2),                        # block-diag add. mask
        pl.BlockSpec((1, HIDDEN), c2),                   # emb LN gamma
        pl.BlockSpec((1, HIDDEN), c2),                   # emb LN beta
        pl.BlockSpec((1, HIDDEN, 3 * HIDDEN), pl3),      # wqkv (fused Q|K|V)
        pl.BlockSpec((1, 1, 3 * HIDDEN), pl3),           # bqkv
        pl.BlockSpec((1, HIDDEN, HIDDEN), pl3),          # wo
        pl.BlockSpec((1, 1, HIDDEN), pl3),               # bo
        pl.BlockSpec((1, 1, HIDDEN), pl3),               # ln1 gamma
        pl.BlockSpec((1, 1, HIDDEN), pl3),               # ln1 beta
        pl.BlockSpec((1, HIDDEN, INTER), pl3),           # w1
        pl.BlockSpec((1, 1, INTER), pl3),                # b1
        pl.BlockSpec((1, INTER, HIDDEN), pl3),           # w2
        pl.BlockSpec((1, 1, HIDDEN), pl3),               # b2
        pl.BlockSpec((1, 1, HIDDEN), pl3),               # ln2 gamma
        pl.BlockSpec((1, 1, HIDDEN), pl3),               # ln2 beta
        pl.BlockSpec((HIDDEN, 4), c2),                   # merged start/end W
        pl.BlockSpec((1, 4), c2),                        # merged start/end b
    ]
    # Layer axis carries the activation -> must stay sequential.  (On v7x a
    # leading "parallel" batch-tile axis would engage the second TensorCore.)
    cparams = pltpu.CompilerParams(dimension_semantics=("arbitrary",))
    scratch = [pltpu.VMEM((M, HIDDEN), jnp.float32)]     # layer-carried x

    if start_positions is not None and end_positions is not None:
        sl = start_positions.reshape(M, 1).astype(jnp.int32)
        el = end_positions.reshape(M, 1).astype(jnp.int32)
        loss = pl.pallas_call(
            _encoder_loss_kernel,
            out_shape=jax.ShapeDtypeStruct((1, 1), jnp.float32),
            grid_spec=pltpu.PrefetchScalarGridSpec(
                num_scalar_prefetch=0, grid=(N_LAYERS,),
                in_specs=base_in_specs + [pl.BlockSpec((M, 1), c2),
                                          pl.BlockSpec((M, 1), c2)],
                out_specs=pl.BlockSpec((1, 1), c2),
                scratch_shapes=scratch),
            compiler_params=cparams,
        )(*operands, sl, el)
        return loss[0, 0]

    logits = pl.pallas_call(
        _encoder_logits_kernel,
        out_shape=jax.ShapeDtypeStruct((M, 4), jnp.float32),
        grid_spec=pltpu.PrefetchScalarGridSpec(
            num_scalar_prefetch=0, grid=(N_LAYERS,),
            in_specs=base_in_specs,
            out_specs=pl.BlockSpec((M, 4), c2),
            scratch_shapes=scratch),
        compiler_params=cparams,
    )(*operands)
    return logits[:, :2], logits[:, 2:]


# ----------------------------- main ------------------------------------------
if __name__ == "__main__":
    key = jax.random.PRNGKey(0)
    pkey, ikey, skey, ekey = jax.random.split(key, 4)
    params = init_params(pkey)

    input_ids = jax.random.randint(ikey, (BATCH, SEQ), 0, VOCAB, dtype=jnp.int32)
    token_type_ids = jnp.zeros((BATCH, SEQ), jnp.int32)
    attention_mask = jnp.ones((BATCH, SEQ), jnp.int32)
    start_positions = jax.random.randint(skey, (BATCH, SEQ), 0, 2, dtype=jnp.int32)
    end_positions = jax.random.randint(ekey, (BATCH, SEQ), 0, 2, dtype=jnp.int32)

    forward = jax.jit(bert_mrc_ner_forward)

    # inference path: (start_logits, end_logits)
    start_logits, end_logits = forward(
        params, input_ids, token_type_ids, attention_mask)
    # training path: scalar total_loss
    total_loss = forward(
        params, input_ids, token_type_ids, attention_mask,
        start_positions, end_positions)

    jax.block_until_ready((start_logits, end_logits, total_loss))
    assert start_logits.shape == (BATCH * SEQ, 2)
    assert end_logits.shape == (BATCH * SEQ, 2)
    assert total_loss.shape == ()
    print("KERNEL_OK")
</pallas_src>

<mosaic_0001>
module attributes {stable_mosaic.version = 11 : i64} {
  func.func @_encoder_logits_kernel(%arg0: i32, %arg1: memref<16x32xf32, #tpu.memory_space<vmem>>, %arg2: memref<16x16xf32, #tpu.memory_space<vmem>>, %arg3: memref<1x32xf32, #tpu.memory_space<vmem>>, %arg4: memref<1x32xf32, #tpu.memory_space<vmem>>, %arg5: memref<1x32x96xf32, #tpu.memory_space<vmem>>, %arg6: memref<1x1x96xf32, #tpu.memory_space<vmem>>, %arg7: memref<1x32x32xf32, #tpu.memory_space<vmem>>, %arg8: memref<1x1x32xf32, #tpu.memory_space<vmem>>, %arg9: memref<1x1x32xf32, #tpu.memory_space<vmem>>, %arg10: memref<1x1x32xf32, #tpu.memory_space<vmem>>, %arg11: memref<1x32x64xf32, #tpu.memory_space<vmem>>, %arg12: memref<1x1x64xf32, #tpu.memory_space<vmem>>, %arg13: memref<1x64x32xf32, #tpu.memory_space<vmem>>, %arg14: memref<1x1x32xf32, #tpu.memory_space<vmem>>, %arg15: memref<1x1x32xf32, #tpu.memory_space<vmem>>, %arg16: memref<1x1x32xf32, #tpu.memory_space<vmem>>, %arg17: memref<32x4xf32, #tpu.memory_space<vmem>>, %arg18: memref<1x4xf32, #tpu.memory_space<vmem>>, %arg19: memref<16x4xf32, #tpu.memory_space<vmem>>, %arg20: memref<16x32xf32, #tpu.memory_space<vmem>>) attributes {dimension_semantics = [#tpu.dimension_semantics<arbitrary>], iteration_bounds = array<i64: 2>, scalar_prefetch = 0 : i64, scratch_operands = 1 : i64, tpu.core_type = #tpu.core_type<tc>, window_params = [{pipeline_mode = #tpu.pipeline_mode<synchronous>, transform_indices = @transform_0, window_bounds = array<i64: 16, 32>}, {pipeline_mode = #tpu.pipeline_mode<synchronous>, transform_indices = @transform_1, window_bounds = array<i64: 16, 16>}, {pipeline_mode = #tpu.pipeline_mode<synchronous>, transform_indices = @transform_2, window_bounds = array<i64: 1, 32>}, {pipeline_mode = #tpu.pipeline_mode<synchronous>, transform_indices = @transform_3, window_bounds = array<i64: 1, 32>}, {transform_indices = @transform_4, window_bounds = array<i64: 1, 32, 96>}, {transform_indices = @transform_5, window_bounds = array<i64: 1, 1, 96>}, {transform_indices = @transform_6, window_bounds = array<i64: 1, 32, 32>}, {transform_indices = @transform_7, window_bounds = array<i64: 1, 1, 32>}, {transform_indices = @transform_8, window_bounds = array<i64: 1, 1, 32>}, {transform_indices = @transform_9, window_bounds = array<i64: 1, 1, 32>}, {transform_indices = @transform_10, window_bounds = array<i64: 1, 32, 64>}, {transform_indices = @transform_11, window_bounds = array<i64: 1, 1, 64>}, {transform_indices = @transform_12, window_bounds = array<i64: 1, 64, 32>}, {transform_indices = @transform_13, window_bounds = array<i64: 1, 1, 32>}, {transform_indices = @transform_14, window_bounds = array<i64: 1, 1, 32>}, {transform_indices = @transform_15, window_bounds = array<i64: 1, 1, 32>}, {pipeline_mode = #tpu.pipeline_mode<synchronous>, transform_indices = @transform_16, window_bounds = array<i64: 32, 4>}, {pipeline_mode = #tpu.pipeline_mode<synchronous>, transform_indices = @transform_17, window_bounds = array<i64: 1, 4>}, {pipeline_mode = #tpu.pipeline_mode<synchronous>, transform_indices = @transform_18, window_bounds = array<i64: 16, 4>}]} {
    %c0_i32 = arith.constant 0 : i32
    %0 = arith.cmpi eq, %arg0, %c0_i32 : i32
    %1 = arith.extui %0 : i1 to i32
    %c0_i32_0 = arith.constant 0 : i32
    %2 = arith.cmpi ne, %1, %c0_i32_0 : i32
    scf.if %2 {
      %c0_88 = arith.constant 0 : index
      %c0_89 = arith.constant 0 : index
      %189 = vector.load %arg1[%c0_88, %c0_89] : memref<16x32xf32, #tpu.memory_space<vmem>>, vector<16x32xf32>
      %c0_90 = arith.constant 0 : index
      %c0_91 = arith.constant 0 : index
      %190 = vector.load %arg3[%c0_90, %c0_91] : memref<1x32xf32, #tpu.memory_space<vmem>>, vector<1x32xf32>
      %c0_92 = arith.constant 0 : index
      %c0_93 = arith.constant 0 : index
      %191 = vector.load %arg4[%c0_92, %c0_93] : memref<1x32xf32, #tpu.memory_space<vmem>>, vector<1x32xf32>
      %cst_94 = arith.constant dense<0.000000e+00> : vector<16xf32>
      %192 = vector.multi_reduction <add>, %189, %cst_94 [1] : vector<16x32xf32> to vector<16xf32>
      %193 = vector.shape_cast %192 : vector<16xf32> to vector<16x1xf32>
      %cst_95 = arith.constant 3.200000e+01 : f32
      %194 = vector.broadcast %cst_95 : f32 to vector<16x1xf32>
      %195 = arith.divf %193, %194 : vector<16x1xf32>
      %196 = vector.broadcast %195 : vector<16x1xf32> to vector<16x32xf32>
      %197 = arith.subf %189, %196 : vector<16x32xf32>
      %198 = arith.mulf %197, %197 : vector<16x32xf32>
      %cst_96 = arith.constant dense<0.000000e+00> : vector<16xf32>
      %199 = vector.multi_reduction <add>, %198, %cst_96 [1] : vector<16x32xf32> to vector<16xf32>
      %200 = vector.shape_cast %199 : vector<16xf32> to vector<16x1xf32>
      %cst_97 = arith.constant 3.200000e+01 : f32
      %201 = vector.broadcast %cst_97 : f32 to vector<16x1xf32>
      %202 = arith.divf %200, %201 : vector<16x1xf32>
      %cst_98 = arith.constant 9.99999996E-13 : f32
      %203 = vector.broadcast %cst_98 : f32 to vector<16x1xf32>
      %204 = arith.addf %202, %203 : vector<16x1xf32>
      %205 = math.rsqrt %204 : vector<16x1xf32>
      %206 = vector.broadcast %205 : vector<16x1xf32> to vector<16x32xf32>
      %207 = arith.mulf %197, %206 : vector<16x32xf32>
      %208 = vector.broadcast %190 : vector<1x32xf32> to vector<16x32xf32>
      %209 = arith.mulf %207, %208 : vector<16x32xf32>
      %210 = vector.broadcast %191 : vector<1x32xf32> to vector<16x32xf32>
      %211 = arith.addf %209, %210 : vector<16x32xf32>
      %c0_99 = arith.constant 0 : index
      %c0_100 = arith.constant 0 : index
      %212 = vector.load %arg20[%c0_99, %c0_100] : memref<16x32xf32, #tpu.memory_space<vmem>>, vector<16x32xf32>
      tpu.vector_store %arg20[%c0_99, %c0_100], %211 {strides = array<i32>} : memref<16x32xf32, #tpu.memory_space<vmem>>, vector<16x32xf32>,
    } else {
    }
    %c0 = arith.constant 0 : index
    %c0_1 = arith.constant 0 : index
    %3 = vector.load %arg20[%c0, %c0_1] : memref<16x32xf32, #tpu.memory_space<vmem>>, vector<16x32xf32>
    %c0_2 = arith.constant 0 : index
    %c0_3 = arith.constant 0 : index
    %4 = vector.load %arg2[%c0_2, %c0_3] : memref<16x16xf32, #tpu.memory_space<vmem>>, vector<16x16xf32>
    %c0_4 = arith.constant 0 : index
    %c0_5 = arith.constant 0 : index
    %c0_6 = arith.constant 0 : index
    %5 = vector.load %arg5[%c0_4, %c0_5, %c0_6] : memref<1x32x96xf32, #tpu.memory_space<vmem>>, vector<1x32x96xf32>
    %6 = vector.shape_cast %5 : vector<1x32x96xf32> to vector<32x96xf32>
    %c0_7 = arith.constant 0 : index
    %c0_8 = arith.constant 0 : index
    %c0_9 = arith.constant 0 : index
    %7 = vector.load %arg6[%c0_7, %c0_8, %c0_9] : memref<1x1x96xf32, #tpu.memory_space<vmem>>, vector<1x1x96xf32>
    %8 = vector.shape_cast %7 : vector<1x1x96xf32> to vector<1x96xf32>
    %c0_10 = arith.constant 0 : index
    %c0_11 = arith.constant 0 : index
    %c0_12 = arith.constant 0 : index
    %9 = vector.load %arg7[%c0_10, %c0_11, %c0_12] : memref<1x32x32xf32, #tpu.memory_space<vmem>>, vector<1x32x32xf32>
    %10 = vector.shape_cast %9 : vector<1x32x32xf32> to vector<32x32xf32>
    %c0_13 = arith.constant 0 : index
    %c0_14 = arith.constant 0 : index
    %c0_15 = arith.constant 0 : index
    %11 = vector.load %arg8[%c0_13, %c0_14, %c0_15] : memref<1x1x32xf32, #tpu.memory_space<vmem>>, vector<1x1x32xf32>
    %12 = vector.shape_cast %11 : vector<1x1x32xf32> to vector<1x32xf32>
    %c0_16 = arith.constant 0 : index
    %c0_17 = arith.constant 0 : index
    %c0_18 = arith.constant 0 : index
    %13 = vector.load %arg9[%c0_16, %c0_17, %c0_18] : memref<1x1x32xf32, #tpu.memory_space<vmem>>, vector<1x1x32xf32>
    %14 = vector.shape_cast %13 : vector<1x1x32xf32> to vector<1x32xf32>
    %c0_19 = arith.constant 0 : index
    %c0_20 = arith.constant 0 : index
    %c0_21 = arith.constant 0 : index
    %15 = vector.load %arg10[%c0_19, %c0_20, %c0_21] : memref<1x1x32xf32, #tpu.memory_space<vmem>>, vector<1x1x32xf32>
    %16 = vector.shape_cast %15 : vector<1x1x32xf32> to vector<1x32xf32>
    %c0_22 = arith.constant 0 : index
    %c0_23 = arith.constant 0 : index
    %c0_24 = arith.constant 0 : index
    %17 = vector.load %arg11[%c0_22, %c0_23, %c0_24] : memref<1x32x64xf32, #tpu.memory_space<vmem>>, vector<1x32x64xf32>
    %18 = vector.shape_cast %17 : vector<1x32x64xf32> to vector<32x64xf32>
    %c0_25 = arith.constant 0 : index
    %c0_26 = arith.constant 0 : index
    %c0_27 = arith.constant 0 : index
    %19 = vector.load %arg12[%c0_25, %c0_26, %c0_27] : memref<1x1x64xf32, #tpu.memory_space<vmem>>, vector<1x1x64xf32>
    %20 = vector.shape_cast %19 : vector<1x1x64xf32> to vector<1x64xf32>
    %c0_28 = arith.constant 0 : index
    %c0_29 = arith.constant 0 : index
    %c0_30 = arith.constant 0 : index
    %21 = vector.load %arg13[%c0_28, %c0_29, %c0_30] : memref<1x64x32xf32, #tpu.memory_space<vmem>>, vector<1x64x32xf32>
    %22 = vector.shape_cast %21 : vector<1x64x32xf32> to vector<64x32xf32>
    %c0_31 = arith.constant 0 : index
    %c0_32 = arith.constant 0 : index
    %c0_33 = arith.constant 0 : index
    %23 = vector.load %arg14[%c0_31, %c0_32, %c0_33] : memref<1x1x32xf32, #tpu.memory_space<vmem>>, vector<1x1x32xf32>
    %24 = vector.shape_cast %23 : vector<1x1x32xf32> to vector<1x32xf32>
    %c0_34 = arith.constant 0 : index
    %c0_35 = arith.constant 0 : index
    %c0_36 = arith.constant 0 : index
    %25 = vector.load %arg15[%c0_34, %c0_35, %c0_36] : memref<1x1x32xf32, #tpu.memory_space<vmem>>, vector<1x1x32xf32>
    %26 = vector.shape_cast %25 : vector<1x1x32xf32> to vector<1x32xf32>
    %c0_37 = arith.constant 0 : index
    %c0_38 = arith.constant 0 : index
    %c0_39 = arith.constant 0 : index
    %27 = vector.load %arg16[%c0_37, %c0_38, %c0_39] : memref<1x1x32xf32, #tpu.memory_space<vmem>>, vector<1x1x32xf32>
    %28 = vector.shape_cast %27 : vector<1x1x32xf32> to vector<1x32xf32>
    %cst = arith.constant dense<0.000000e+00> : vector<16x96xf32>
    %29 = tpu.matmul %3, %6, %cst {dimension_numbers = #tpu.dot_dimension_numbers<[1], [0], [0], [1], [0, 0, 1, 1], [], []>} : vector<16x32xf32>, vector<32x96xf32>, vector<16x96xf32> -> vector<16x96xf32>
    %30 = vector.broadcast %8 : vector<1x96xf32> to vector<16x96xf32>
    %31 = arith.addf %29, %30 : vector<16x96xf32>
    %32 = vector.extract_strided_slice %31 {offsets = [0, 0], sizes = [16, 8], strides = [1, 1]} : vector<16x96xf32> to vector<16x8xf32>
    %33 = vector.extract_strided_slice %31 {offsets = [0, 32], sizes = [16, 8], strides = [1, 1]} : vector<16x96xf32> to vector<16x8xf32>
    %34 = vector.extract_strided_slice %31 {offsets = [0, 64], sizes = [16, 8], strides = [1, 1]} : vector<16x96xf32> to vector<16x8xf32>
    %cst_40 = arith.constant dense<0.000000e+00> : vector<16x16xf32>
    %35 = tpu.matmul %32, %33, %cst_40 {dimension_numbers = #tpu.dot_dimension_numbers<[1], [1], [0], [0], [0, 0, 1, 0], [], []>} : vector<16x8xf32>, vector<16x8xf32>, vector<16x16xf32> -> vector<16x16xf32>
    %36 = arith.addf %35, %4 : vector<16x16xf32>
    %cst_41 = arith.constant dense<0xFF800000> : vector<16xf32>
    %37 = vector.multi_reduction <maximumf>, %36, %cst_41 [1] : vector<16x16xf32> to vector<16xf32>
    %38 = vector.shape_cast %37 : vector<16xf32> to vector<16x1xf32>
    %39 = vector.broadcast %38 : vector<16x1xf32> to vector<16x16xf32>
    %40 = arith.subf %36, %39 : vector<16x16xf32>
    %41 = math.exp %40 : vector<16x16xf32>
    %cst_42 = arith.constant dense<0.000000e+00> : vector<16xf32>
    %42 = vector.multi_reduction <add>, %41, %cst_42 [1] : vector<16x16xf32> to vector<16xf32>
    %43 = vector.shape_cast %42 : vector<16xf32> to vector<16x1xf32>
    %44 = vector.broadcast %43 : vector<16x1xf32> to vector<16x16xf32>
    %45 = arith.divf %41, %44 : vector<16x16xf32>
    %cst_43 = arith.constant dense<0.000000e+00> : vector<16x8xf32>
    %46 = tpu.matmul %45, %34, %cst_43 {dimension_numbers = #tpu.dot_dimension_numbers<[1], [0], [0], [1], [0, 0, 1, 1], [], []>} : vector<16x16xf32>, vector<16x8xf32>, vector<16x8xf32> -> vector<16x8xf32>
    %47 = vector.extract_strided_slice %31 {offsets = [0, 8], sizes = [16, 8], strides = [1, 1]} : vector<16x96xf32> to vector<16x8xf32>
    %48 = vector.extract_strided_slice %31 {offsets = [0, 40], sizes = [16, 8], strides = [1, 1]} : vector<16x96xf32> to vector<16x8xf32>
    %49 = vector.extract_strided_slice %31 {offsets = [0, 72], sizes = [16, 8], strides = [1, 1]} : vector<16x96xf32> to vector<16x8xf32>
    %cst_44 = arith.constant dense<0.000000e+00> : vector<16x16xf32>
    %50 = tpu.matmul %47, %48, %cst_44 {dimension_numbers = #tpu.dot_dimension_numbers<[1], [1], [0], [0], [0, 0, 1, 0], [], []>} : vector<16x8xf32>, vector<16x8xf32>, vector<16x16xf32> -> vector<16x16xf32>
    %51 = arith.addf %50, %4 : vector<16x16xf32>
    %cst_45 = arith.constant dense<0xFF800000> : vector<16xf32>
    %52 = vector.multi_reduction <maximumf>, %51, %cst_45 [1] : vector<16x16xf32> to vector<16xf32>
    %53 = vector.shape_cast %52 : vector<16xf32> to vector<16x1xf32>
    %54 = vector.broadcast %53 : vector<16x1xf32> to vector<16x16xf32>
    %55 = arith.subf %51, %54 : vector<16x16xf32>
    %56 = math.exp %55 : vector<16x16xf32>
    %cst_46 = arith.constant dense<0.000000e+00> : vector<16xf32>
    %57 = vector.multi_reduction <add>, %56, %cst_46 [1] : vector<16x16xf32> to vector<16xf32>
    %58 = vector.shape_cast %57 : vector<16xf32> to vector<16x1xf32>
    %59 = vector.broadcast %58 : vector<16x1xf32> to vector<16x16xf32>
    %60 = arith.divf %56, %59 : vector<16x16xf32>
    %cst_47 = arith.constant dense<0.000000e+00> : vector<16x8xf32>
    %61 = tpu.matmul %60, %49, %cst_47 {dimension_numbers = #tpu.dot_dimension_numbers<[1], [0], [0], [1], [0, 0, 1, 1], [], []>} : vector<16x16xf32>, vector<16x8xf32>, vector<16x8xf32> -> vector<16x8xf32>
    %62 = vector.extract_strided_slice %31 {offsets = [0, 16], sizes = [16, 8], strides = [1, 1]} : vector<16x96xf32> to vector<16x8xf32>
    %63 = vector.extract_strided_slice %31 {offsets = [0, 48], sizes = [16, 8], strides = [1, 1]} : vector<16x96xf32> to vector<16x8xf32>
    %64 = vector.extract_strided_slice %31 {offsets = [0, 80], sizes = [16, 8], strides = [1, 1]} : vector<16x96xf32> to vector<16x8xf32>
    %cst_48 = arith.constant dense<0.000000e+00> : vector<16x16xf32>
    %65 = tpu.matmul %62, %63, %cst_48 {dimension_numbers = #tpu.dot_dimension_numbers<[1], [1], [0], [0], [0, 0, 1, 0], [], []>} : vector<16x8xf32>, vector<16x8xf32>, vector<16x16xf32> -> vector<16x16xf32>
    %66 = arith.addf %65, %4 : vector<16x16xf32>
    %cst_49 = arith.constant dense<0xFF800000> : vector<16xf32>
    %67 = vector.multi_reduction <maximumf>, %66, %cst_49 [1] : vector<16x16xf32> to vector<16xf32>
    %68 = vector.shape_cast %67 : vector<16xf32> to vector<16x1xf32>
    %69 = vector.broadcast %68 : vector<16x1xf32> to vector<16x16xf32>
    %70 = arith.subf %66, %69 : vector<16x16xf32>
    %71 = math.exp %70 : vector<16x16xf32>
    %cst_50 = arith.constant dense<0.000000e+00> : vector<16xf32>
    %72 = vector.multi_reduction <add>, %71, %cst_50 [1] : vector<16x16xf32> to vector<16xf32>
    %73 = vector.shape_cast %72 : vector<16xf32> to vector<16x1xf32>
    %74 = vector.broadcast %73 : vector<16x1xf32> to vector<16x16xf32>
    %75 = arith.divf %71, %74 : vector<16x16xf32>
    %cst_51 = arith.constant dense<0.000000e+00> : vector<16x8xf32>
    %76 = tpu.matmul %75, %64, %cst_51 {dimension_numbers = #tpu.dot_dimension_numbers<[1], [0], [0], [1], [0, 0, 1, 1], [], []>} : vector<16x16xf32>, vector<16x8xf32>, vector<16x8xf32> -> vector<16x8xf32>
    %77 = vector.extract_strided_slice %31 {offsets = [0, 24], sizes = [16, 8], strides = [1, 1]} : vector<16x96xf32> to vector<16x8xf32>
    %78 = vector.extract_strided_slice %31 {offsets = [0, 56], sizes = [16, 8], strides = [1, 1]} : vector<16x96xf32> to vector<16x8xf32>
    %79 = vector.extract_strided_slice %31 {offsets = [0, 88], sizes = [16, 8], strides = [1, 1]} : vector<16x96xf32> to vector<16x8xf32>
    %cst_52 = arith.constant dense<0.000000e+00> : vector<16x16xf32>
    %80 = tpu.matmul %77, %78, %cst_52 {dimension_numbers = #tpu.dot_dimension_numbers<[1], [1], [0], [0], [0, 0, 1, 0], [], []>} : vector<16x8xf32>, vector<16x8xf32>, vector<16x16xf32> -> vector<16x16xf32>
    %81 = arith.addf %80, %4 : vector<16x16xf32>
    %cst_53 = arith.constant dense<0xFF800000> : vector<16xf32>
    %82 = vector.multi_reduction <maximumf>, %81, %cst_53 [1] : vector<16x16xf32> to vector<16xf32>
    %83 = vector.shape_cast %82 : vector<16xf32> to vector<16x1xf32>
    %84 = vector.broadcast %83 : vector<16x1xf32> to vector<16x16xf32>
    %85 = arith.subf %81, %84 : vector<16x16xf32>
    %86 = math.exp %85 : vector<16x16xf32>
    %cst_54 = arith.constant dense<0.000000e+00> : vector<16xf32>
    %87 = vector.multi_reduction <add>, %86, %cst_54 [1] : vector<16x16xf32> to vector<16xf32>
    %88 = vector.shape_cast %87 : vector<16xf32> to vector<16x1xf32>
    %89 = vector.broadcast %88 : vector<16x1xf32> to vector<16x16xf32>
    %90 = arith.divf %86, %89 : vector<16x16xf32>
    %cst_55 = arith.constant dense<0.000000e+00> : vector<16x8xf32>
    %91 = tpu.matmul %90, %79, %cst_55 {dimension_numbers = #tpu.dot_dimension_numbers<[1], [0], [0], [1], [0, 0, 1, 1], [], []>} : vector<16x16xf32>, vector<16x8xf32>, vector<16x8xf32> -> vector<16x8xf32>
    %92 = tpu.concatenate %46, %61, %76, %91 in 1 : vector<16x8xf32>, vector<16x8xf32>, vector<16x8xf32>, vector<16x8xf32> -> vector<16x32xf32>
    %cst_56 = arith.constant dense<0.000000e+00> : vector<16x32xf32>
    %93 = tpu.matmul %92, %10, %cst_56 {dimension_numbers = #tpu.dot_dimension_numbers<[1], [0], [0], [1], [0, 0, 1, 1], [], []>} : vector<16x32xf32>, vector<32x32xf32>, vector<16x32xf32> -> vector<16x32xf32>
    %94 = vector.broadcast %12 : vector<1x32xf32> to vector<16x32xf32>
    %95 = arith.addf %93, %94 : vector<16x32xf32>
    %96 = arith.addf %95, %3 : vector<16x32xf32>
    %cst_57 = arith.constant dense<0.000000e+00> : vector<16xf32>
    %97 = vector.multi_reduction <add>, %96, %cst_57 [1] : vector<16x32xf32> to vector<16xf32>
    %98 = vector.shape_cast %97 : vector<16xf32> to vector<16x1xf32>
    %cst_58 = arith.constant 3.200000e+01 : f32
    %99 = vector.broadcast %cst_58 : f32 to vector<16x1xf32>
    %100 = arith.divf %98, %99 : vector<16x1xf32>
    %101 = vector.broadcast %100 : vector<16x1xf32> to vector<16x32xf32>
    %102 = arith.subf %96, %101 : vector<16x32xf32>
    %103 = arith.mulf %102, %102 : vector<16x32xf32>
    %cst_59 = arith.constant dense<0.000000e+00> : vector<16xf32>
    %104 = vector.multi_reduction <add>, %103, %cst_59 [1] : vector<16x32xf32> to vector<16xf32>
    %105 = vector.shape_cast %104 : vector<16xf32> to vector<16x1xf32>
    %cst_60 = arith.constant 3.200000e+01 : f32
    %106 = vector.broadcast %cst_60 : f32 to vector<16x1xf32>
    %107 = arith.divf %105, %106 : vector<16x1xf32>
    %cst_61 = arith.constant 9.99999996E-13 : f32
    %108 = vector.broadcast %cst_61 : f32 to vector<16x1xf32>
    %109 = arith.addf %107, %108 : vector<16x1xf32>
    %110 = math.rsqrt %109 : vector<16x1xf32>
    %111 = vector.broadcast %110 : vector<16x1xf32> to vector<16x32xf32>
    %112 = arith.mulf %102, %111 : vector<16x32xf32>
    %113 = vector.broadcast %14 : vector<1x32xf32> to vector<16x32xf32>
    %114 = arith.mulf %112, %113 : vector<16x32xf32>
    %115 = vector.broadcast %16 : vector<1x32xf32> to vector<16x32xf32>
    %116 = arith.addf %114, %115 : vector<16x32xf32>
    %cst_62 = arith.constant dense<0.000000e+00> : vector<16x64xf32>
    %117 = tpu.matmul %116, %18, %cst_62 {dimension_numbers = #tpu.dot_dimension_numbers<[1], [0], [0], [1], [0, 0, 1, 1], [], []>} : vector<16x32xf32>, vector<32x64xf32>, vector<16x64xf32> -> vector<16x64xf32>
    %118 = vector.broadcast %20 : vector<1x64xf32> to vector<16x64xf32>
    %119 = arith.addf %117, %118 : vector<16x64xf32>
    %cst_63 = arith.constant 5.000000e-01 : f32
    %120 = vector.broadcast %cst_63 : f32 to vector<16x64xf32>
    %121 = arith.mulf %120, %119 : vector<16x64xf32>
    %cst_64 = arith.constant 0.707106769 : f32
    %122 = vector.broadcast %cst_64 : f32 to vector<16x64xf32>
    %123 = arith.mulf %119, %122 : vector<16x64xf32>
    %cst_65 = arith.constant 0.000000e+00 : f32
    %124 = vector.broadcast %cst_65 : f32 to vector<16x64xf32>
    %125 = arith.cmpf olt, %123, %124 : vector<16x64xf32>
    %cst_66 = arith.constant -1.000000e+00 : f32
    %cst_67 = arith.constant 1.000000e+00 : f32
    %126 = vector.broadcast %cst_66 : f32 to vector<16x64xf32>
    %127 = vector.broadcast %cst_67 : f32 to vector<16x64xf32>
    %128 = arith.select %125, %126, %127 : vector<16x64xi1>, vector<16x64xf32>
    %129 = math.absf %123 : vector<16x64xf32>
    %cst_68 = arith.constant 0.327591091 : f32
    %130 = vector.broadcast %cst_68 : f32 to vector<16x64xf32>
    %131 = arith.mulf %130, %129 : vector<16x64xf32>
    %cst_69 = arith.constant 1.000000e+00 : f32
    %132 = vector.broadcast %cst_69 : f32 to vector<16x64xf32>
    %133 = arith.addf %132, %131 : vector<16x64xf32>
    %cst_70 = arith.constant 1.000000e+00 : f32
    %134 = vector.broadcast %cst_70 : f32 to vector<16x64xf32>
    %135 = arith.divf %134, %133 : vector<16x64xf32>
    %cst_71 = arith.constant 1.06140542 : f32
    %136 = vector.broadcast %cst_71 : f32 to vector<16x64xf32>
    %137 = arith.mulf %136, %135 : vector<16x64xf32>
    %cst_72 = arith.constant -1.45315206 : f32
    %138 = vector.broadcast %cst_72 : f32 to vector<16x64xf32>
    %139 = arith.addf %137, %138 : vector<16x64xf32>
    %140 = arith.mulf %139, %135 : vector<16x64xf32>
    %cst_73 = arith.constant 1.42141378 : f32
    %141 = vector.broadcast %cst_73 : f32 to vector<16x64xf32>
    %142 = arith.addf %140, %141 : vector<16x64xf32>
    %143 = arith.mulf %142, %135 : vector<16x64xf32>
    %cst_74 = arith.constant -0.284496725 : f32
    %144 = vector.broadcast %cst_74 : f32 to vector<16x64xf32>
    %145 = arith.addf %143, %144 : vector<16x64xf32>
    %146 = arith.mulf %145, %135 : vector<16x64xf32>
    %cst_75 = arith.constant 0.254829586 : f32
    %147 = vector.broadcast %cst_75 : f32 to vector<16x64xf32>
    %148 = arith.addf %146, %147 : vector<16x64xf32>
    %149 = arith.mulf %148, %135 : vector<16x64xf32>
    %cst_76 = arith.constant 0.000000e+00 : f32
    %150 = vector.broadcast %cst_76 : f32 to vector<16x64xf32>
    %151 = arith.subf %150, %129 : vector<16x64xf32>
    %152 = arith.mulf %151, %129 : vector<16x64xf32>
    %153 = math.exp %152 : vector<16x64xf32>
    %154 = arith.mulf %149, %153 : vector<16x64xf32>
    %cst_77 = arith.constant 1.000000e+00 : f32
    %155 = vector.broadcast %cst_77 : f32 to vector<16x64xf32>
    %156 = arith.subf %155, %154 : vector<16x64xf32>
    %157 = arith.mulf %128, %156 : vector<16x64xf32>
    %cst_78 = arith.constant 1.000000e+00 : f32
    %158 = vector.broadcast %cst_78 : f32 to vector<16x64xf32>
    %159 = arith.addf %158, %157 : vector<16x64xf32>
    %160 = arith.mulf %121, %159 : vector<16x64xf32>
    %cst_79 = arith.constant dense<0.000000e+00> : vector<16x32xf32>
    %161 = tpu.matmul %160, %22, %cst_79 {dimension_numbers = #tpu.dot_dimension_numbers<[1], [0], [0], [1], [0, 0, 1, 1], [], []>} : vector<16x64xf32>, vector<64x32xf32>, vector<16x32xf32> -> vector<16x32xf32>
    %162 = vector.broadcast %24 : vector<1x32xf32> to vector<16x32xf32>
    %163 = arith.addf %161, %162 : vector<16x32xf32>
    %164 = arith.addf %163, %116 : vector<16x32xf32>
    %cst_80 = arith.constant dense<0.000000e+00> : vector<16xf32>
    %165 = vector.multi_reduction <add>, %164, %cst_80 [1] : vector<16x32xf32> to vector<16xf32>
    %166 = vector.shape_cast %165 : vector<16xf32> to vector<16x1xf32>
    %cst_81 = arith.constant 3.200000e+01 : f32
    %167 = vector.broadcast %cst_81 : f32 to vector<16x1xf32>
    %168 = arith.divf %166, %167 : vector<16x1xf32>
    %169 = vector.broadcast %168 : vector<16x1xf32> to vector<16x32xf32>
    %170 = arith.subf %164, %169 : vector<16x32xf32>
    %171 = arith.mulf %170, %170 : vector<16x32xf32>
    %cst_82 = arith.constant dense<0.000000e+00> : vector<16xf32>
    %172 = vector.multi_reduction <add>, %171, %cst_82 [1] : vector<16x32xf32> to vector<16xf32>
    %173 = vector.shape_cast %172 : vector<16xf32> to vector<16x1xf32>
    %cst_83 = arith.constant 3.200000e+01 : f32
    %174 = vector.broadcast %cst_83 : f32 to vector<16x1xf32>
    %175 = arith.divf %173, %174 : vector<16x1xf32>
    %cst_84 = arith.constant 9.99999996E-13 : f32
    %176 = vector.broadcast %cst_84 : f32 to vector<16x1xf32>
    %177 = arith.addf %175, %176 : vector<16x1xf32>
    %178 = math.rsqrt %177 : vector<16x1xf32>
    %179 = vector.broadcast %178 : vector<16x1xf32> to vector<16x32xf32>
    %180 = arith.mulf %170, %179 : vector<16x32xf32>
    %181 = vector.broadcast %26 : vector<1x32xf32> to vector<16x32xf32>
    %182 = arith.mulf %180, %181 : vector<16x32xf32>
    %183 = vector.broadcast %28 : vector<1x32xf32> to vector<16x32xf32>
    %184 = arith.addf %182, %183 : vector<16x32xf32>
    %c0_85 = arith.constant 0 : index
    %c0_86 = arith.constant 0 : index
    %185 = vector.load %arg20[%c0_85, %c0_86] : memref<16x32xf32, #tpu.memory_space<vmem>>, vector<16x32xf32>
    tpu.vector_store %arg20[%c0_85, %c0_86], %184 {strides = array<i32>} : memref<16x32xf32, #tpu.memory_space<vmem>>, vector<16x32xf32>,
    %c1_i32 = arith.constant 1 : i32
    %186 = arith.cmpi eq, %arg0, %c1_i32 : i32
    %187 = arith.extui %186 : i1 to i32
    %c0_i32_87 = arith.constant 0 : i32
    %188 = arith.cmpi ne, %187, %c0_i32_87 : i32
    scf.if %188 {
      %c0_88 = arith.constant 0 : index
      %c0_89 = arith.constant 0 : index
      %189 = vector.load %arg20[%c0_88, %c0_89] : memref<16x32xf32, #tpu.memory_space<vmem>>, vector<16x32xf32>
      %c0_90 = arith.constant 0 : index
      %c0_91 = arith.constant 0 : index
      %190 = vector.load %arg17[%c0_90, %c0_91] : memref<32x4xf32, #tpu.memory_space<vmem>>, vector<32x4xf32>
      %c0_92 = arith.constant 0 : index
      %c0_93 = arith.constant 0 : index
      %191 = vector.load %arg18[%c0_92, %c0_93] : memref<1x4xf32, #tpu.memory_space<vmem>>, vector<1x4xf32>
      %cst_94 = arith.constant dense<0.000000e+00> : vector<16x4xf32>
      %192 = tpu.matmul %189, %190, %cst_94 {dimension_numbers = #tpu.dot_dimension_numbers<[1], [0], [0], [1], [0, 0, 1, 1], [], []>} : vector<16x32xf32>, vector<32x4xf32>, vector<16x4xf32> -> vector<16x4xf32>
      %193 = vector.broadcast %191 : vector<1x4xf32> to vector<16x4xf32>
      %194 = arith.addf %192, %193 : vector<16x4xf32>
      %c0_95 = arith.constant 0 : index
      %c0_96 = arith.constant 0 : index
      %195 = vector.load %arg19[%c0_95, %c0_96] : memref<16x4xf32, #tpu.memory_space<vmem>>, vector<16x4xf32>
      tpu.vector_store %arg19[%c0_95, %c0_96], %194 {strides = array<i32>} : memref<16x4xf32, #tpu.memory_space<vmem>>, vector<16x4xf32>,
    } else {
    }
    return
  }
  func.func @transform_0(%arg0: i32) -> (i32, i32) {
    %c0_i32 = arith.constant 0 : i32
    %c0_i32_0 = arith.constant 0 : i32
    %c0_i32_1 = arith.constant 0 : i32
    return %c0_i32, %c0_i32_0 : i32, i32
  }
  func.func @transform_1(%arg0: i32) -> (i32, i32) {
    %c0_i32 = arith.constant 0 : i32
    %c0_i32_0 = arith.constant 0 : i32
    %c0_i32_1 = arith.constant 0 : i32
    return %c0_i32, %c0_i32_0 : i32, i32
  }
  func.func @transform_2(%arg0: i32) -> (i32, i32) {
    %c0_i32 = arith.constant 0 : i32
    %c0_i32_0 = arith.constant 0 : i32
    %c0_i32_1 = arith.constant 0 : i32
    return %c0_i32, %c0_i32_0 : i32, i32
  }
  func.func @transform_3(%arg0: i32) -> (i32, i32) {
    %c0_i32 = arith.constant 0 : i32
    %c0_i32_0 = arith.constant 0 : i32
    %c0_i32_1 = arith.constant 0 : i32
    return %c0_i32, %c0_i32_0 : i32, i32
  }
  func.func @transform_4(%arg0: i32) -> (i32, i32, i32) {
    %c0_i32 = arith.constant 0 : i32
    %c0_i32_0 = arith.constant 0 : i32
    %c0_i32_1 = arith.constant 0 : i32
    return %arg0, %c0_i32, %c0_i32_0 : i32, i32, i32
  }
  func.func @transform_5(%arg0: i32) -> (i32, i32, i32) {
    %c0_i32 = arith.constant 0 : i32
    %c0_i32_0 = arith.constant 0 : i32
    %c0_i32_1 = arith.constant 0 : i32
    return %arg0, %c0_i32, %c0_i32_0 : i32, i32, i32
  }
  func.func @transform_6(%arg0: i32) -> (i32, i32, i32) {
    %c0_i32 = arith.constant 0 : i32
    %c0_i32_0 = arith.constant 0 : i32
    %c0_i32_1 = arith.constant 0 : i32
    return %arg0, %c0_i32, %c0_i32_0 : i32, i32, i32
  }
  func.func @transform_7(%arg0: i32) -> (i32, i32, i32) {
    %c0_i32 = arith.constant 0 : i32
    %c0_i32_0 = arith.constant 0 : i32
    %c0_i32_1 = arith.constant 0 : i32
    return %arg0, %c0_i32, %c0_i32_0 : i32, i32, i32
  }
  func.func @transform_8(%arg0: i32) -> (i32, i32, i32) {
    %c0_i32 = arith.constant 0 : i32
    %c0_i32_0 = arith.constant 0 : i32
    %c0_i32_1 = arith.constant 0 : i32
    return %arg0, %c0_i32, %c0_i32_0 : i32, i32, i32
  }
  func.func @transform_9(%arg0: i32) -> (i32, i32, i32) {
    %c0_i32 = arith.constant 0 : i32
    %c0_i32_0 = arith.constant 0 : i32
    %c0_i32_1 = arith.constant 0 : i32
    return %arg0, %c0_i32, %c0_i32_0 : i32, i32, i32
  }
  func.func @transform_10(%arg0: i32) -> (i32, i32, i32) {
    %c0_i32 = arith.constant 0 : i32
    %c0_i32_0 = arith.constant 0 : i32
    %c0_i32_1 = arith.constant 0 : i32
    return %arg0, %c0_i32, %c0_i32_0 : i32, i32, i32
  }
  func.func @transform_11(%arg0: i32) -> (i32, i32, i32) {
    %c0_i32 = arith.constant 0 : i32
    %c0_i32_0 = arith.constant 0 : i32
    %c0_i32_1 = arith.constant 0 : i32
    return %arg0, %c0_i32, %c0_i32_0 : i32, i32, i32
  }
  func.func @transform_12(%arg0: i32) -> (i32, i32, i32) {
    %c0_i32 = arith.constant 0 : i32
    %c0_i32_0 = arith.constant 0 : i32
    %c0_i32_1 = arith.constant 0 : i32
    return %arg0, %c0_i32, %c0_i32_0 : i32, i32, i32
  }
  func.func @transform_13(%arg0: i32) -> (i32, i32, i32) {
    %c0_i32 = arith.constant 0 : i32
    %c0_i32_0 = arith.constant 0 : i32
    %c0_i32_1 = arith.constant 0 : i32
    return %arg0, %c0_i32, %c0_i32_0 : i32, i32, i32
  }
  func.func @transform_14(%arg0: i32) -> (i32, i32, i32) {
    %c0_i32 = arith.constant 0 : i32
    %c0_i32_0 = arith.constant 0 : i32
    %c0_i32_1 = arith.constant 0 : i32
    return %arg0, %c0_i32, %c0_i32_0 : i32, i32, i32
  }
  func.func @transform_15(%arg0: i32) -> (i32, i32, i32) {
    %c0_i32 = arith.constant 0 : i32
    %c0_i32_0 = arith.constant 0 : i32
    %c0_i32_1 = arith.constant 0 : i32
    return %arg0, %c0_i32, %c0_i32_0 : i32, i32, i32
  }
  func.func @transform_16(%arg0: i32) -> (i32, i32) {
    %c0_i32 = arith.constant 0 : i32
    %c0_i32_0 = arith.constant 0 : i32
    %c0_i32_1 = arith.constant 0 : i32
    return %c0_i32, %c0_i32_0 : i32, i32
  }
  func.func @transform_17(%arg0: i32) -> (i32, i32) {
    %c0_i32 = arith.constant 0 : i32
    %c0_i32_0 = arith.constant 0 : i32
    %c0_i32_1 = arith.constant 0 : i32
    return %c0_i32, %c0_i32_0 : i32, i32
  }
  func.func @transform_18(%arg0: i32) -> (i32, i32) {
    %c0_i32 = arith.constant 0 : i32
    %c0_i32_0 = arith.constant 0 : i32
    %c0_i32_1 = arith.constant 0 : i32
    return %c0_i32, %c0_i32_0 : i32, i32
  }
}

</mosaic_0001>

<bundles_post_ra>
// kernel: bert_mrc_ner_forward.1
= control target key start
LH: loop header
LB: loop body
LE: loop exit
PB: predicated region body
PF: predicated region fallthrough
CT: control target
= control target key end

     0   :  { %s2953_s27 = smov 0   ;;  %s3271_s0 = inlined_call_operand.vmem [shape: f32[16,32], index: 0, kind: input, shape index: {}]   ;;  %s3272_s1 = inlined_call_operand.vmem [shape: f32[16,16], index: 1, kind: input, shape index: {}]   ;;  %s3273_s2 = inlined_call_operand.vmem [shape: f32[1,32], index: 2, kind: input, shape index: {}]   ;;  %s3274_s3 = inlined_call_operand.vmem [shape: f32[1,32], index: 3, kind: input, shape index: {}]   ;;  %s3275_s4 = inlined_call_operand.vmem [shape: f32[2,32,96], index: 4, kind: input, shape index: {}]   ;;  %s3276_s5 = inlined_call_operand.vmem [shape: f32[2,1,96], index: 5, kind: input, shape index: {}]   ;;  %s3277_s6 = inlined_call_operand.vmem [shape: f32[2,32,32], index: 6, kind: input, shape index: {}]   ;;  %s3278_s7 = inlined_call_operand.vmem [shape: f32[2,1,32], index: 7, kind: input, shape index: {}]   ;;  %s3279_s8 = inlined_call_operand.vmem [shape: f32[2,1,32], index: 8, kind: input, shape index: {}]   ;;  %s3280_s9 = inlined_call_operand.vmem [shape: f32[2,1,32], index: 9, kind: input, shape index: {}]   ;;  %s3281_s10 = inlined_call_operand.vmem [shape: f32[2,32,64], index: 10, kind: input, shape index: {}]   ;;  %s3282_s11 = inlined_call_operand.vmem [shape: f32[2,1,64], index: 11, kind: input, shape index: {}]   ;;  %s3283_s12 = inlined_call_operand.vmem [shape: f32[2,64,32], index: 12, kind: input, shape index: {}]   ;;  %s3284_s13 = inlined_call_operand.vmem [shape: f32[2,1,32], index: 13, kind: input, shape index: {}]   ;;  %s3285_s14 = inlined_call_operand.vmem [shape: f32[2,1,32], index: 14, kind: input, shape index: {}]   ;;  %s3286_s15 = inlined_call_operand.vmem [shape: f32[2,1,32], index: 15, kind: input, shape index: {}]   ;;  %s3287_s16 = inlined_call_operand.vmem [shape: f32[32,4], index: 16, kind: input, shape index: {}]   ;;  %s3288_s17 = inlined_call_operand.vmem [shape: f32[1,4], index: 17, kind: input, shape index: {}]   ;;  %s3289_s18 = inlined_call_operand.vmem [shape: f32[16,4], index: 18, kind: output, shape index: {}]  }
   0x1   :  { %3296 = sst [smem:[#allocation5_spill]] %s3271_s0 }
   0x2   :  { %3297 = sst [smem:[#allocation6_spill]] %s3272_s1 }
   0x3   :  { %3298 = sst [smem:[#allocation7_spill]] %s3273_s2 }
   0x4   :  { %3299 = sst [smem:[#allocation8_spill]] %s3275_s4 }
   0x5   :  { %3300 = sst [smem:[#allocation9_spill]] %s3277_s6 }
   0x6   :  { %3301 = sst [smem:[#allocation10_spill]] %s3287_s16 }
   0x7   :  { %3302 = sst [smem:[#allocation11_spill]] %s3288_s17 }
   0x8   :  { %3303 = sst [smem:[#allocation12_spill]] %s3289_s18 }
   0x9 LB: > { %3304 = sst [smem:[#allocation3_spill]] %s2841_s27  ;;  %s2959_s28 = sadd.s32 4294967295, %s2841_s27   ;;  %s2841_s27 = sphi %s2953_s27, %s28_s27  }
   0xa   : > { %p2385_p0 = scmp.ge.s32.totalorder %s2841_s27, 1  ;;  %p601_p1 = scmp.lt.s32.totalorder %s2841_s27, 3 }
   0xc   : > { %p602_p2 = pnand %p2385_p0, %p601_p1 }
   0xe   : > { %605 = sbr.rel (%p602_p2) target bundleno = 4248 (0x1098), region = 92 }
  0x15   : > { %p689_p3 = scmp.lt.s32.totalorder %s2959_s28, 1  ;;  %s3305_s4 = sld [smem:[#allocation8_spill]] }
  0x16   : > { %s3306_s6 = sld [smem:[#allocation9_spill]]  ;;  %p2394_p4 = scmp.ne.s32.totalorder %s2959_s28, 0 }
  0x17   : > { %s2965_s29 = scalar_select %p689_p3, %s2959_s28, 1 }
  0x18   : > { %736 = sbr.rel (%p2394_p4) target bundleno = 349 (0x15d), region = 96  ;;  %s3308_s25 = sld [smem:[#allocation5_spill]] (!%p2394_p4)  ;;  %vm741_vm0 = vcmask (!%p2394_p4), 261120   ;;  %v2396_v23 = vld [vmem:[%s3274_s3] ss:$0 sm:$0xff] (!%p2394_p4) }
  0x19   : > { %s2443_s30 = sshll.u32 %s2965_s29, 5  ;;  %s726_s0 = scalar_lea.vmem %s3284_s13, %s2965_s29 }
  0x1a   : > { %s729_s20 = scalar_lea.vmem %s3285_s14, %s2965_s29  ;;  %s732_s16 = scalar_lea.vmem %s3286_s15, %s2965_s29 }
  0x1b   : > { %s2975_s22 = scalar_lea.vmem %s3305_s4, %s2443_s30  ;;  %s2997_s4 = scalar_lea.vmem %s3281_s10, %s2443_s30 }
  0x1c   : > { %s2980_s24 = scalar_lea.vmem %s3306_s6, %s2443_s30  ;;  %s718_s6 = scalar_lea.vmem %s3282_s11, %s2965_s29 }
  0x1d   : > { %3307 = sst [smem:[#allocation4_spill]] %s2980_s24  ;;  %s2446_s24 = sshll.u32 %s2965_s29, 6 }
  0x1e   : > { %s3007_s27 = scalar_lea.vmem %s3283_s12, %s2446_s24  ;;  %v737_v0 = vld [vmem:[%s3308_s25] sm:$0xff] (!%p2394_p4)  ;;  %v738_v1 = vld [vmem:[%s3308_s25 + $0x8] sm:$0xff] (!%p2394_p4)  ;;  %s3309_s18 = sld [smem:[#allocation7_spill]] (!%p2394_p4) }
  0x1f   : > { %v742_v2 = vsel %vm741_vm0, %v737_v0, 0.0  ;;  %v745_v3 = vsel %vm741_vm0, %v738_v1, 0.0 }
  0x20   : > { %743 = vadd.xlane.f32.xlu0 %v742_v2 }
  0x24   : > { %746 = vadd.xlane.f32.xlu0 %v745_v3  ;;  %v2395_v21 = vld [vmem:[%s3309_s18] ss:$0 sm:$0xff] }
  0xad   : > { %v744_v4 = vpop.xlane.xlu0 %743 }
  0xae   : > { %v749_v5 = vmul.f32 0.03125, %v744_v4 }
  0xb0   : > { %v751_v6 = vsub.f32 %v737_v0, %v749_v5 }
  0xb1   : > { %v747_v7 = vpop.xlane.xlu0 %746 }
  0xb2   : > { %v750_v8 = vmul.f32 0.03125, %v747_v7  ;;  %v753_v9 = vmul.f32 %v751_v6, %v751_v6 }
  0xb4   : > { %v752_v10 = vsub.f32 %v738_v1, %v750_v8  ;;  %v755_v11 = vsel %vm741_vm0, %v753_v9, 0.0 }
  0xb5   : > { %756 = vadd.xlane.f32.xlu1 %v755_v11 }
  0xb6   : > { %v754_v12 = vmul.f32 %v752_v10, %v752_v10 }
  0xb8   : > { %v758_v13 = vsel %vm741_vm0, %v754_v12, 0.0 }
  0xb9   : > { %759 = vadd.xlane.f32.xlu1 %v758_v13 }
 0x142   : > { %v757_v14 = vpop.xlane.xlu1 %756 }
 0x143   : > { %v761_v15 = vmul.f32 0.03125, %v757_v14 }
 0x145   : > { %v763_v16 = vadd.f32 1e-12, %v761_v15 }
 0x146   : > { %v760_v17 = vpop.xlane.xlu1 %759 }
 0x147   : > { %2743 = vrsqrt.f32 %v763_v16  ;;  %v762_v18 = vmul.f32 0.03125, %v760_v17 }
 0x149   : > { %v764_v19 = vadd.f32 1e-12, %v762_v18 }
 0x14b   : > { %2745 = vrsqrt.f32 %v764_v19 }
 0x151   : > { %v2744_v20 = vpop.eup %2743 }
 0x152   : > { %v767_v22 = vmul.f32 %v2744_v20, %v751_v6 }
 0x154   : > { %v775_v24 = vmul.f32 %v2395_v21, %v767_v22 }
 0x155   : > { %v2746_v25 = vpop.eup %2745 }
 0x156   : > { %v783_v26 = vadd.f32 %v2396_v23, %v775_v24  ;;  %v768_v27 = vmul.f32 %v2746_v25, %v752_v10 }
 0x158   : > { %785 = vst.msk [vmem:[#allocation2] sm:$0xff] %vm741_vm0, %v783_v26  ;;  %v776_v28 = vmul.f32 %v2395_v21, %v768_v27 }
 0x15a   : > { %v784_v29 = vadd.f32 %v2396_v23, %v776_v28 }
 0x15c   : > { %786 = vst.msk [vmem:[#allocation2 + $0x8] sm:$0xff] %vm741_vm0, %v784_v29 }
 0x15d PF: > { %v791_v30 = vld [vmem:[%s2975_s22] sm:$0xff]  ;;  %v792_v31 = vld [vmem:[%s2975_s22 + $0x8] sm:$0xff]  ;;  %v793_v32 = vld [vmem:[%s2975_s22 + $0x10] sm:$0xff]  ;;  %vm825_vm1 = vcmask 261120   ;;  %s3310_s23 = scalar_lea.vmem %s3276_s5, %s2965_s29  ;;  %vm913_vm2 = vcmask 64512   ;;  %s2844_s24 = smov 96  }
 0x15e   : > { %v2632_v33 = vpack.c.bf16 %v792_v31, %v791_v30  ;;  %v794_v34 = vld [vmem:[%s2975_s22 + $0x18] sm:$0xff]  ;;  %v2397_v38 = vld [vmem:[%s3310_s23] ss:$0 sm:$0xff]  ;;  %s2843_s22 = smov 120   ;;  %s2845_s26 = smov 88   ;;  %vm3073_vm3 = vmpackc.low %vm913_vm2, %vm913_vm2  ;;  %vm997_vm4 = vcmask 130048  }
 0x15f   : > { %v3044_v35 = vld [vmem:[#allocation2] sm:$0xff]  ;;  %v2636_v36 = vpack.c.bf16 %v794_v34, %v793_v32  ;;  %s3313_s18 = sld [smem:[#allocation6_spill]]  ;;  %s2846_s21 = smov 64   ;;  %vm1735_vm5 = vcmask 195584   ;;  %vm2017_vm8 = vcmask 523264  }
 0x160   : > { %2521 = vmatprep.mubr.msk.f32.mxu1 %vm825_vm1, %v3044_v35  ;;  %2633 = vmatprep.subr.bf16.mxu1 %v2632_v33  ;;  %s2847_s2 = smov 80   ;;  %s2848_s23 = smov 56  }
 0x161   : > { %2635 = vmatpush3.bf16.msra.mxu1 %v2632_v33  ;;  %s2852_s1 = smov 48   ;;  %s2853_s17 = smov 8  }
 0x162   : > { %2637 = vmatprep.subr.bf16.mxu1 %v2636_v36  ;;  %s2854_s19 = smov 40   ;;  %s2855_s30 = smov 16  }
 0x163   : > { %v3048_v37 = vld [vmem:[#allocation2 + $0x8] sm:$0xff]  ;;  %p2437_p5 = scmp.ne.s32.totalorder %s2959_s28, 1 }
 0x164   : > { %vm2243_vm9 = vcmask (!%p2437_p5), 31744  }
 0x165   : > { %2639 = vmatpush3.bf16.msra.mxu1 %v2636_v36  ;;  %v3092_v55 = vld [vmem:[%s3313_s18 + $0x8] sm:$0xff]  ;;  %v3097_v56 = vld [vmem:[%s3313_s18] sm:$0xff] }
 0x168   : > { %2522 = vmatmul.mubr.msk.f32.vlgmr.msra.gmra.mrb[0].mxu1 %vm825_vm1, %v3048_v37 }
 0x23b   : > { %v2523_v39 = vpop.f32.mrb[0].mxu1 }
 0x23c   : > { %v3057_v40 = vadd.f32 %v2523_v39, %v2397_v38  ;;  %v898_v41 = vpop.f32.mrb[1].mxu1 }
 0x23d   : > { %v3059_v42 = vadd.f32 %v2397_v38, %v898_v41 }
 0x23f   : > { %1107 = vrot.lane.b32.xlu1 %v3059_v42, %s2843_s22  ;;  %2528 = vmatprep.mubr.msk.f32.mxu1 %vm913_vm2, %v3059_v42  ;;  %v3066_v43 = vpack.i.bf16 %v3057_v40, %v3059_v42 }
 0x241   : > { %2748 = vrot.lane.b32.xlu0 %v3066_v43, %s2844_s24  ;;  %s2850_s24 = smov 72  }
 0x243   : > { %1109 = vrot.lane.b32.xlu1 %v3057_v40, %s2843_s22  ;;  %s2849_s22 = smov 112  }
 0x245   : > { %2753 = vrot.lane.b32.xlu0 %v3066_v43, %s2845_s26  ;;  %s2851_s26 = smov 104  }
 0x2b1   : > { %v1108_v53 = vpop.permute.xlu1 %1107 }
 0x2b3   : > { %v2749_v44 = vpop.permute.xlu0 %2748 }
 0x2b4   : > { %v2751_v45 = vunpack.i.h.bf16 %v2749_v44  ;;  %v2750_v46 = vunpack.i.l.bf16 %v2749_v44 }
 0x2b5   : > { %v1110_v54 = vpop.permute.xlu1 %1109 }
 0x2b6   : > { %v2640_v48 = vpack.c.bf16 %v2751_v45, %v2750_v46 }
 0x2b7   : > { %v2754_v49 = vpop.permute.xlu0 %2753 }
 0x2b8   : > { %v2756_v50 = vunpack.i.h.bf16 %v2754_v49  ;;  %v2755_v51 = vunpack.i.l.bf16 %v2754_v49  ;;  %2642 = vmatprep.subr.msk.bf16.mxu1 %vm3073_vm3, %v2640_v48 }
 0x2b9   : > { %2645 = vmatpush3.bf16.xpose.msk.msra.mxu1 %vm3073_vm3, %v2640_v48 }
 0x2ba   : > { %v2650_v52 = vpack.c.bf16 %v2756_v50, %v2755_v51 }
 0x2bc   : > { %2652 = vmatprep.subr.msk.bf16.mxu1 %vm3073_vm3, %v2650_v52 }
 0x2c0   : > { %2529 = vmatmul.mubr.msk.f32.vlgmr.msra.gmra.mrb[2].mxu1 %vm913_vm2, %v3057_v40 }
 0x2c1   : > { %2655 = vmatpush3.bf16.xpose.msk.msra.mxu1 %vm3073_vm3, %v2650_v52  ;;  %2542 = vmatprep.mubr.msk.f32.mxu1 %vm913_vm2, %v1108_v53 }
 0x2c8   : > { %2543 = vmatmul.mubr.msk.f32.vlgmr.msra.gmra.mrb[4].mxu1 %vm913_vm2, %v1110_v54 }
 0x393   : > { %v2530_v57 = vpop.f32.mrb[2].mxu1 }
 0x394   : > { %v994_v58 = vadd.f32 %v2530_v57, %v3092_v55  ;;  %v988_v59 = vpop.f32.mrb[3].mxu1 }
 0x395   : > { %v989_v60 = vadd.f32 %v988_v59, %v3097_v56 }
 0x396   : > { %v1001_v61 = vsel %vm997_vm4, %v994_v58, -inf }
 0x397   : > { %1002 = vmax.xlane.f32.xlu1 %v1001_v61  ;;  %v998_v62 = vsel %vm997_vm4, %v989_v60, -inf }
 0x398   : > { %999 = vmax.xlane.f32.xlu0 %v998_v62 }
 0x39b   : > { %v2544_v63 = vpop.f32.mrb[4].mxu1 }
 0x39c   : > { %v1189_v0 = vpop.f32.mrb[5].mxu1  ;;  %v1195_v2 = vadd.f32 %v2544_v63, %v3092_v55 }
 0x39d   : > { %v1190_v1 = vadd.f32 %v1189_v0, %v3097_v56 }
 0x39e   : > { %v1201_v4 = vsel %vm997_vm4, %v1195_v2, -inf }
 0x39f   : > { %v1198_v3 = vsel %vm997_vm4, %v1190_v1, -inf }
 0x3a0   : > { %1199 = vmax.xlane.f32.xlu0 %v1198_v3 }
 0x3a4   : > { %1202 = vmax.xlane.f32.xlu0 %v1201_v4 }
 0x3a8   : > { %2758 = vrot.lane.b32.xlu1 %v3066_v43, %s2846_s21  ;;  %s3314_s21 = sld [smem:[#allocation4_spill]] }
 0x424   : > { %v1003_v5 = vpop.xlane.xlu1 %1002 }
 0x425   : > { %v1005_v6 = vsub.f32 %v994_v58, %v1003_v5  ;;  %v1000_v7 = vpop.xlane.xlu0 %999 }
 0x426   : > { %v1004_v8 = vsub.f32 %v989_v60, %v1000_v7 }
 0x427   : > { %v1008_v9 = vmul.f32 1.442695, %v1005_v6 }
 0x428   : > { %v1006_v10 = vmul.f32 1.442695, %v1004_v8  ;;  %v2759_v11 = vpop.permute.xlu1 %2758 }
 0x429   : > { %2787 = vpow2.f32 %v1008_v9  ;;  %v2761_v12 = vunpack.i.h.bf16 %v2759_v11  ;;  %v2760_v13 = vunpack.i.l.bf16 %v2759_v11 }
 0x42a   : > { %2789 = vpow2.f32 %v1006_v10 }
 0x42b   : > { %v2646_v14 = vpack.c.bf16 %v2761_v12, %v2760_v13 }
 0x42d   : > { %2647 = vmatprep.subr.bf16.mxu0 %v2646_v14  ;;  %v1200_v15 = vpop.xlane.xlu0 %1199 }
 0x42e   : > { %2649 = vmatpush3.bf16.msra.mxu0 %v2646_v14  ;;  %v1204_v25 = vsub.f32 %v1190_v1, %v1200_v15 }
 0x430   : > { %v1206_v26 = vmul.f32 1.442695, %v1204_v25 }
 0x431   : > { %v1203_v16 = vpop.xlane.xlu0 %1202 }
 0x432   : > { %v1205_v17 = vsub.f32 %v1195_v2, %v1203_v16 }
 0x433   : > { %v2788_v18 = vpop.eup %2787 }
 0x434   : > { %v2790_v19 = vpop.eup %2789  ;;  %v1208_v20 = vmul.f32 1.442695, %v1205_v17  ;;  %v1013_v21 = vsel %vm997_vm4, %v2788_v18, 0.0 }
 0x435   : > { %1014 = vadd.xlane.f32.xlu0 %v1013_v21  ;;  %v1010_v22 = vsel %vm997_vm4, %v2790_v19, 0.0 }
 0x436   : > { %2791 = vpow2.f32 %v1208_v20  ;;  %1011 = vadd.xlane.f32.xlu1 %v1010_v22 }
 0x437   : > { %2793 = vpow2.f32 %v1206_v26 }
 0x440   : > { %v2792_v23 = vpop.eup %2791 }
 0x441   : > { %v1213_v24 = vsel %vm997_vm4, %v2792_v23, 0.0  ;;  %v2794_v27 = vpop.eup %2793 }
 0x442   : > { %1214 = vadd.xlane.f32.xlu0 %v1213_v24  ;;  %v1210_v28 = vsel %vm997_vm4, %v2794_v27, 0.0 }
 0x447   : > { %2768 = vrot.lane.b32.xlu1 %v3066_v43, %s2847_s2  ;;  %s2856_s2 = smov 24  }
 0x458   : > { %2763 = vrot.lane.b32.xlu0 %v3066_v43, %s2848_s23 }
 0x45c   : > { %1309 = vrot.lane.b32.xlu0 %v3057_v40, %s2849_s22 }
 0x46b   : > { %1211 = vadd.xlane.f32.xlu1 %v1210_v28 }
 0x47c   : > { %1307 = vrot.lane.b32.xlu1 %v3059_v42, %s2849_s22 }
 0x4c2   : > { %v1015_v29 = vpop.xlane.xlu0 %1014 }
 0x4c3   : > { %2795 = vrcp.f32 %v1015_v29  ;;  %v1012_v30 = vpop.xlane.xlu1 %1011 }
 0x4c4   : > { %2797 = vrcp.f32 %v1012_v30 }
 0x4c7   : > { %v2769_v38 = vpop.permute.xlu1 %2768 }
 0x4c8   : > { %v2771_v41 = vunpack.i.h.bf16 %v2769_v38  ;;  %v2770_v44 = vunpack.i.l.bf16 %v2769_v38 }
 0x4ca   : > { %v2660_v49 = vpack.c.bf16 %v2771_v41, %v2770_v44 }
 0x4cd   : > { %v2796_v31 = vpop.eup %2795 }
 0x4ce   : > { %v2798_v32 = vpop.eup %2797  ;;  %v1019_v36 = vmul.f32 %v2796_v31, %v2788_v18 }
 0x4cf   : > { %v1215_v33 = vpop.xlane.xlu0 %1214  ;;  %v1017_v34 = vmul.f32 %v2798_v32, %v2790_v19 }
 0x4d0   : > { %2799 = vrcp.f32 %v1215_v33 }
 0x4d1   : > { %2535 = vmatprep.mubr.msk.f32.mxu0 %vm997_vm4, %v1017_v34 }
 0x4d2   : > { %2536 = vmatmul.mubr.msk.f32.vlgmr.msra.gmra.mrb[0].mxu0 %vm997_vm4, %v1019_v36 }
 0x4d3   : > { %v2764_v39 = vpop.permute.xlu0 %2763 }
 0x4d4   : > { %v2766_v45 = vunpack.i.h.bf16 %v2764_v39  ;;  %v2765_v46 = vunpack.i.l.bf16 %v2764_v39 }
 0x4d6   : > { %v2656_v48 = vpack.c.bf16 %v2766_v45, %v2765_v46 }
 0x4d7   : > { %v1310_v58 = vpop.permute.xlu0 %1309 }
 0x4d8   : > { %2657 = vmatprep.subr.bf16.mxu0 %v2656_v48 }
 0x4d9   : > { %2659 = vmatpush3.bf16.msra.mxu0 %v2656_v48 }
 0x4da   : > { %2662 = vmatprep.subr.msk.bf16.mxu0 %vm3073_vm3, %v2660_v49  ;;  %v2800_v51 = vpop.eup %2799 }
 0x4db   : > { %v1219_v54 = vmul.f32 %v2800_v51, %v2792_v23 }
 0x4f8   : > { %v1212_v50 = vpop.xlane.xlu1 %1211 }
 0x4f9   : > { %2801 = vrcp.f32 %v1212_v50 }
 0x4fc   : > { %v1308_v57 = vpop.permute.xlu1 %1307 }
 0x503   : > { %v2802_v52 = vpop.eup %2801 }
 0x504   : > { %v1217_v53 = vmul.f32 %v2802_v52, %v2794_v27 }
 0x506   : > { %2549 = vmatprep.mubr.msk.f32.mxu0 %vm997_vm4, %v1217_v53 }
 0x507   : > { %2550 = vmatmul.mubr.msk.f32.vlgmr.msra.gmra.mrb[2].mxu0 %vm997_vm4, %v1219_v54 }
 0x508   : > { %2665 = vmatpush3.bf16.xpose.msk.msra.mxu0 %vm3073_vm3, %v2660_v49  ;;  %2556 = vmatprep.mubr.msk.f32.mxu0 %vm913_vm2, %v1308_v57 }
 0x50f   : > { %2557 = vmatmul.mubr.msk.f32.vlgmr.msra.gmra.mrb[4].mxu0 %vm913_vm2, %v1310_v58 }
 0x5a5   : > { %v3126_v59 = vpop.f32.mrb[0].mxu0 }
 0x5a6   : > { %v3128_v60 = vpop.f32.mrb[1].mxu0 }
 0x5da   : > { %v3130_v61 = vpop.f32.mrb[2].mxu0 }
 0x5db   : > { %v3132_v62 = vpop.f32.mrb[3].mxu0 }
 0x5e2   : > { %v2558_v63 = vpop.f32.mrb[4].mxu0 }
 0x5e3   : > { %v1395_v0 = vadd.f32 %v2558_v63, %v3092_v55  ;;  %v1389_v1 = vpop.f32.mrb[5].mxu0  ;;  %v796_v63 = vld [vmem:[%s3314_s21] sm:$0xff] }
 0x5e4   : > { %v1390_v2 = vadd.f32 %v1389_v1, %v3097_v56  ;;  %v798_v1 = vld [vmem:[%s3314_s21 + $0x10] sm:$0xff] }
 0x5e5   : > { %v1401_v3 = vsel %vm997_vm4, %v1395_v0, -inf }
 0x5e6   : > { %1402 = vmax.xlane.f32.xlu0 %v1401_v3  ;;  %v1398_v4 = vsel %vm997_vm4, %v1390_v2, -inf  ;;  %v799_v3 = vld [vmem:[%s3314_s21 + $0x18] sm:$0xff] }
 0x5e7   : > { %1399 = vmax.xlane.f32.xlu1 %v1398_v4  ;;  %v2684_v4 = vpack.c.bf16 %v799_v3, %v798_v1  ;;  %v813_v3 = vld [vmem:[%s3007_s27 + $0x28] sm:$0xff] }
 0x673   : > { %v1403_v5 = vpop.xlane.xlu0 %1402 }
 0x674   : > { %v1405_v6 = vsub.f32 %v1395_v0, %v1403_v5  ;;  %v1400_v7 = vpop.xlane.xlu1 %1399  ;;  %v797_v0 = vld [vmem:[%s3314_s21 + $0x8] sm:$0xff] }
 0x675   : > { %v1404_v8 = vsub.f32 %v1390_v2, %v1400_v7  ;;  %v2680_v2 = vpack.c.bf16 %v797_v0, %v796_v63  ;;  %v810_v63 = vld [vmem:[%s3007_s27 + $0x10] sm:$0xff]  ;;  %v811_v0 = vld [vmem:[%s3007_s27 + $0x18] sm:$0xff] }
 0x676   : > { %v1408_v9 = vmul.f32 1.442695, %v1405_v6  ;;  %v2700_v1 = vpack.c.bf16 %v811_v0, %v810_v63 }
 0x677   : > { %v1406_v10 = vmul.f32 1.442695, %v1404_v8 }
 0x678   : > { %2803 = vpow2.f32 %v1408_v9 }
 0x679   : > { %2805 = vpow2.f32 %v1406_v10 }
 0x682   : > { %v2804_v11 = vpop.eup %2803 }
 0x683   : > { %v2806_v12 = vpop.eup %2805  ;;  %v1413_v13 = vsel %vm997_vm4, %v2804_v11, 0.0 }
 0x684   : > { %1414 = vadd.xlane.f32.xlu1 %v1413_v13  ;;  %v1410_v14 = vsel %vm997_vm4, %v2806_v12, 0.0 }
 0x685   : > { %1411 = vadd.xlane.f32.xlu0 %v1410_v14 }
 0x695   : > { %2778 = vrot.lane.b32.xlu1 %v3066_v43, %s2850_s24  ;;  %s3315_s24 = scalar_lea.vmem %s3278_s7, %s2965_s29 }
 0x699   : > { %1507 = vrot.lane.b32.xlu1 %v3059_v42, %s2851_s26 }
 0x69b   : > { %2773 = vrot.lane.b32.xlu0 %v3066_v43, %s2852_s1  ;;  %s3318_s1 = sld [smem:[#allocation10_spill]] (!%p2437_p5) }
 0x69f   : > { %1509 = vrot.lane.b32.xlu0 %v3057_v40, %s2851_s26 }
 0x711   : > { %v1415_v15 = vpop.xlane.xlu1 %1414 }
 0x712   : > { %2807 = vrcp.f32 %v1415_v15  ;;  %v1412_v16 = vpop.xlane.xlu0 %1411 }
 0x713   : > { %2809 = vrcp.f32 %v1412_v16 }
 0x715   : > { %v2779_v17 = vpop.permute.xlu1 %2778 }
 0x716   : > { %v2774_v18 = vpop.permute.xlu0 %2773  ;;  %v2781_v19 = vunpack.i.h.bf16 %v2779_v17  ;;  %v2780_v20 = vunpack.i.l.bf16 %v2779_v17 }
 0x717   : > { %v2776_v21 = vunpack.i.h.bf16 %v2774_v18  ;;  %v2775_v22 = vunpack.i.l.bf16 %v2774_v18 }
 0x718   : > { %v2670_v24 = vpack.c.bf16 %v2781_v19, %v2780_v20 }
 0x719   : > { %v2666_v23 = vpack.c.bf16 %v2776_v21, %v2775_v22  ;;  %v1508_v27 = vpop.permute.xlu1 %1507 }
 0x71a   : > { %v1510_v28 = vpop.permute.xlu0 %1509 }
 0x71b   : > { %2667 = vmatprep.subr.bf16.mxu1 %v2666_v23 }
 0x71c   : > { %v2808_v25 = vpop.eup %2807  ;;  %2669 = vmatpush3.bf16.msra.mxu1 %v2666_v23 }
 0x71d   : > { %v2810_v42 = vpop.eup %2809  ;;  %2672 = vmatprep.subr.msk.bf16.mxu1 %vm3073_vm3, %v2670_v24  ;;  %v1419_v26 = vmul.f32 %v2808_v25, %v2804_v11 }
 0x71e   : > { %v1417_v40 = vmul.f32 %v2810_v42, %v2806_v12 }
 0x720   : > { %2563 = vmatprep.mubr.msk.f32.mxu1 %vm997_vm4, %v1417_v40 }
 0x721   : > { %2564 = vmatmul.mubr.msk.f32.vlgmr.msra.gmra.mrb[6].mxu1 %vm997_vm4, %v1419_v26 }
 0x722   : > { %2570 = vmatprep.mubr.msk.f32.mxu1 %vm913_vm2, %v1508_v27 }
 0x725   : > { %2675 = vmatpush3.bf16.xpose.msk.msra.mxu1 %vm3073_vm3, %v2670_v24 }
 0x72c   : > { %2571 = vmatmul.mubr.msk.f32.vlgmr.msra.gmra.mrb[8].mxu1 %vm913_vm2, %v1510_v28 }
 0x7f4   : > { %v2565_v29 = vpop.f32.mrb[6].mxu1 }
 0x7f5   : > { %v1498_v30 = vpop.f32.mrb[7].mxu1 }
 0x7ff   : > { %v2572_v31 = vpop.f32.mrb[8].mxu1 }
 0x800   : > { %v1595_v32 = vadd.f32 %v2572_v31, %v3092_v55  ;;  %v1589_v33 = vpop.f32.mrb[9].mxu1 }
 0x801   : > { %v1590_v34 = vadd.f32 %v1589_v33, %v3097_v56  ;;  %v804_v33 = vld [vmem:[%s2997_s4 + $0x8] sm:$0xff] }
 0x802   : > { %v1601_v36 = vsel %vm997_vm4, %v1595_v32, -inf }
 0x803   : > { %1602 = vmax.xlane.f32.xlu0 %v1601_v36  ;;  %v1598_v38 = vsel %vm997_vm4, %v1590_v34, -inf  ;;  %v805_v36 = vld [vmem:[%s2997_s4 + $0x10] sm:$0xff] }
 0x804   : > { %1599 = vmax.xlane.f32.xlu1 %v1598_v38  ;;  %v806_v38 = vld [vmem:[%s2997_s4 + $0x18] sm:$0xff] }
 0x890   : > { %v1603_v39 = vpop.xlane.xlu0 %1602 }
 0x891   : > { %v1605_v47 = vsub.f32 %v1595_v32, %v1603_v39  ;;  %v1600_v41 = vpop.xlane.xlu1 %1599  ;;  %v803_v32 = vld [vmem:[%s2997_s4] sm:$0xff]  ;;  %v2692_v39 = vpack.c.bf16 %v806_v38, %v805_v36 }
 0x892   : > { %v1604_v44 = vsub.f32 %v1590_v34, %v1600_v41  ;;  %v2688_v34 = vpack.c.bf16 %v804_v33, %v803_v32 }
 0x893   : > { %v1608_v45 = vmul.f32 1.442695, %v1605_v47 }
 0x894   : > { %v1606_v46 = vmul.f32 1.442695, %v1604_v44  ;;  %2689 = vmatprep.subr.bf16.mxu1 %v2688_v34 }
 0x895   : > { %2811 = vpow2.f32 %v1608_v45  ;;  %2691 = vmatpush3.bf16.msra.mxu1 %v2688_v34 }
 0x896   : > { %2813 = vpow2.f32 %v1606_v46  ;;  %2693 = vmatprep.subr.bf16.mxu1 %v2692_v39 }
 0x899   : > { %2695 = vmatpush3.bf16.msra.mxu1 %v2692_v39 }
 0x89f   : > { %v2812_v48 = vpop.eup %2811 }
 0x8a0   : > { %v2814_v49 = vpop.eup %2813  ;;  %v1613_v55 = vsel %vm997_vm4, %v2812_v48, 0.0 }
 0x8a1   : > { %1614 = vadd.xlane.f32.xlu1 %v1613_v55  ;;  %v1610_v56 = vsel %vm997_vm4, %v2814_v49, 0.0 }
 0x8a2   : > { %1611 = vadd.xlane.f32.xlu0 %v1610_v56 }
 0x8b2   : > { %1709 = vrot.lane.b32.xlu1 %v3132_v62, %s2853_s17 }
 0x8b6   : > { %1711 = vrot.lane.b32.xlu1 %v3130_v61, %s2853_s17  ;;  %s3316_s17 = scalar_lea.vmem %s3279_s8, %s2965_s29 }
 0x8b7   : > { %v2427_v55 = vld [vmem:[%s3316_s17] ss:$0 sm:$0xff] }
 0x8b8   : > { %2783 = vrot.lane.b32.xlu0 %v3066_v43, %s2854_s19 }
 0x8ba   : > { %1719 = vrot.lane.b32.xlu1 %v2565_v29, %s2855_s30 }
 0x8bc   : > { %1717 = vrot.lane.b32.xlu0 %v1498_v30, %s2855_s30  ;;  %s3317_s30 = scalar_lea.vmem %s3280_s9, %s2965_s29 }
 0x92e   : > { %v1615_v50 = vpop.xlane.xlu1 %1614 }
 0x92f   : > { %2815 = vrcp.f32 %v1615_v50  ;;  %v1612_v51 = vpop.xlane.xlu0 %1611  ;;  %v2428_v50 = vld [vmem:[%s3317_s30] ss:$0 sm:$0xff] }
 0x930   : > { %2817 = vrcp.f32 %v1612_v51 }
 0x932   : > { %v1710_v7 = vpop.permute.xlu1 %1709 }
 0x933   : > { %v2784_v52 = vpop.permute.xlu0 %2783  ;;  %v1731_v11 = vsel %vm913_vm2, %v3128_v60, %v1710_v7  ;;  %v2424_v60 = vld [vmem:[%s3315_s24] ss:$0 sm:$0xff] }
 0x934   : > { %v2786_v53 = vunpack.i.h.bf16 %v2784_v52  ;;  %v2785_v54 = vunpack.i.l.bf16 %v2784_v52 }
 0x936   : > { %v2676_v57 = vpack.c.bf16 %v2786_v53, %v2785_v54  ;;  %v1712_v8 = vpop.permute.xlu1 %1711 }
 0x937   : > { %v1718_v10 = vpop.permute.xlu0 %1717  ;;  %v1732_v13 = vsel %vm913_vm2, %v3126_v59, %v1712_v8  ;;  %v2429_v8 = vld [vmem:[%s718_s6] ss:$0 sm:$0xff] }
 0x938   : > { %2677 = vmatprep.subr.bf16.mxu0 %v2676_v57  ;;  %v1733_v14 = vsel %vm997_vm4, %v1731_v11, %v1718_v10 }
 0x939   : > { %v2816_v58 = vpop.eup %2815  ;;  %2679 = vmatpush3.bf16.msra.mxu0 %v2676_v57 }
 0x93a   : > { %v2818_v61 = vpop.eup %2817  ;;  %v1619_v62 = vmul.f32 %v2816_v58, %v2812_v48  ;;  %2681 = vmatprep.subr.bf16.mxu0 %v2680_v2  ;;  %v1720_v9 = vpop.permute.xlu1 %1719 }
 0x93b   : > { %v1617_v43 = vmul.f32 %v2818_v61, %v2814_v49  ;;  %v1734_v16 = vsel %vm997_vm4, %v1732_v13, %v1720_v9  ;;  %v808_v61 = vld [vmem:[%s3007_s27] sm:$0xff] }
 0x93d   : > { %2577 = vmatprep.mubr.msk.f32.mxu0 %vm997_vm4, %v1617_v43  ;;  %v809_v43 = vld [vmem:[%s3007_s27 + $0x8] sm:$0xff] }
 0x93e   : > { %2578 = vmatmul.mubr.msk.f32.vlgmr.msra.gmra.mrb[6].mxu0 %vm997_vm4, %v1619_v62  ;;  %v2696_v62 = vpack.c.bf16 %v809_v43, %v808_v61 }
 0x93f   : > { %2683 = vmatpush3.bf16.msra.mxu0 %v2680_v2  ;;  %v812_v2 = vld [vmem:[%s3007_s27 + $0x20] sm:$0xff] }
 0x940   : > { %2685 = vmatprep.subr.bf16.mxu0 %v2684_v4 }
 0x943   : > { %2687 = vmatpush3.bf16.msra.mxu0 %v2684_v4  ;;  %v2704_v4 = vpack.c.bf16 %v813_v3, %v812_v2  ;;  %v2432_v2 = vld [vmem:[%s726_s0] ss:$0 sm:$0xff]  ;;  %s3320_s0 = sld [smem:[#allocation12_spill]] (!%p2437_p5) }
 0x944   : > { %2697 = vmatprep.subr.bf16.mxu0 %v2696_v62 }
 0xa11   : > { %v2579_v5 = vpop.f32.mrb[6].mxu0 }
 0xa12   : > { %1727 = vrot.lane.b32.xlu1 %v2579_v5, %s2856_s2  ;;  %v1698_v6 = vpop.f32.mrb[7].mxu0  ;;  %v814_v5 = vld [vmem:[%s3007_s27 + $0x30] sm:$0xff] }
 0xa13   : > { %1725 = vrot.lane.b32.xlu0 %v1698_v6, %s2856_s2  ;;  %v815_v6 = vld [vmem:[%s3007_s27 + $0x38] sm:$0xff]  ;;  %s3319_s2 = sld [smem:[#allocation11_spill]] (!%p2437_p5) }
 0xa14   : > { %v2708_v7 = vpack.c.bf16 %v815_v6, %v814_v5 }
 0xa84   : > { %v1728_v12 = vpop.permute.xlu1 %1727 }
 0xa85   : > { %v1726_v15 = vpop.permute.xlu0 %1725  ;;  %v1737_v18 = vsel %vm1735_vm5, %v1734_v16, %v1728_v12 }
 0xa86   : > { %v1736_v17 = vsel %vm1735_vm5, %v1733_v14, %v1726_v15 }
 0xa87   : > { %2588 = vmatprep.mubr.msk.f32.mxu0 %vm825_vm1, %v1736_v17 }
 0xa88   : > { %2589 = vmatmul.mubr.msk.f32.vlgmr.msra.gmra.mrb[8].mxu0 %vm825_vm1, %v1737_v18 }
 0xa89   : > { %2699 = vmatpush3.bf16.msra.mxu0 %v2696_v62 }
 0xa8a   : > { %2701 = vmatprep.subr.bf16.mxu0 %v2700_v1 }
 0xa8d   : > { %2703 = vmatpush3.bf16.msra.mxu0 %v2700_v1 }
 0xa8e   : > { %2705 = vmatprep.subr.bf16.mxu0 %v2704_v4 }
 0xa91   : > { %2707 = vmatpush3.bf16.msra.mxu0 %v2704_v4 }
 0xa92   : > { %2709 = vmatprep.subr.bf16.mxu0 %v2708_v7 }
 0xa95   : > { %2711 = vmatpush3.bf16.msra.mxu0 %v2708_v7 }
 0xb5b   : > { %v2590_v19 = vpop.f32.mrb[8].mxu0 }
 0xb5c   : > { %v1822_v20 = vadd.f32 %v2590_v19, %v2424_v60  ;;  %v1816_v21 = vpop.f32.mrb[9].mxu0 }
 0xb5d   : > { %v1817_v59 = vadd.f32 %v2424_v60, %v1816_v21 }
 0xb5e   : > { %v1826_v22 = vadd.f32 %v1822_v20, %v3048_v37 }
 0xb5f   : > { %v1825_v23 = vadd.f32 %v1817_v59, %v3044_v35 }
 0xb60   : > { %v1830_v24 = vsel %vm825_vm1, %v1826_v22, 0.0 }
 0xb61   : > { %1831 = vadd.xlane.f32.xlu1 %v1830_v24  ;;  %v1827_v25 = vsel %vm825_vm1, %v1825_v23, 0.0 }
 0xb62   : > { %1828 = vadd.xlane.f32.xlu0 %v1827_v25 }
 0xbee   : > { %v1832_v42 = vpop.xlane.xlu1 %1831 }
 0xbef   : > { %v1835_v40 = vmul.f32 0.03125, %v1832_v42  ;;  %v1829_v26 = vpop.xlane.xlu0 %1828 }
 0xbf0   : > { %v1834_v27 = vmul.f32 0.03125, %v1829_v26 }
 0xbf1   : > { %v1837_v28 = vsub.f32 %v1826_v22, %v1835_v40 }
 0xbf2   : > { %v1836_v29 = vsub.f32 %v1825_v23, %v1834_v27 }
 0xbf3   : > { %v1839_v35 = vmul.f32 %v1837_v28, %v1837_v28 }
 0xbf4   : > { %v1838_v30 = vmul.f32 %v1836_v29, %v1836_v29 }
 0xbf5   : > { %v1843_v31 = vsel %vm825_vm1, %v1839_v35, 0.0 }
 0xbf6   : > { %v1840_v37 = vsel %vm825_vm1, %v1838_v30, 0.0 }
 0xbf7   : > { %1841 = vadd.xlane.f32.xlu0 %v1840_v37 }
 0xbfb   : > { %1844 = vadd.xlane.f32.xlu0 %v1843_v31 }
 0xc84   : > { %v1842_v47 = vpop.xlane.xlu0 %1841 }
 0xc85   : > { %v1846_v41 = vmul.f32 0.03125, %v1842_v47 }
 0xc87   : > { %v1848_v44 = vadd.f32 1e-12, %v1846_v41 }
 0xc88   : > { %v1845_v45 = vpop.xlane.xlu0 %1844 }
 0xc89   : > { %2819 = vrsqrt.f32 %v1848_v44  ;;  %v1847_v46 = vmul.f32 0.03125, %v1845_v45 }
 0xc8b   : > { %v1849_v48 = vadd.f32 1e-12, %v1847_v46 }
 0xc8d   : > { %2821 = vrsqrt.f32 %v1849_v48 }
 0xc93   : > { %v2820_v49 = vpop.eup %2819 }
 0xc94   : > { %v1852_v56 = vmul.f32 %v2820_v49, %v1836_v29 }
 0xc96   : > { %v1860_v51 = vmul.f32 %v2427_v55, %v1852_v56  ;;  %v2857_v56 = vmov 1.0  }
 0xc97   : > { %v2822_v52 = vpop.eup %2821 }
 0xc98   : > { %v1853_v53 = vmul.f32 %v2822_v52, %v1837_v28  ;;  %v3200_v54 = vadd.f32 %v2428_v50, %v1860_v51 }
 0xc9a   : > { %v1861_v57 = vmul.f32 %v2427_v55, %v1853_v53  ;;  %2599 = vmatprep.mubr.msk.f32.mxu1 %vm825_vm1, %v3200_v54 }
 0xc9c   : > { %v3204_v58 = vadd.f32 %v2428_v50, %v1861_v57 }
 0xc9e   : > { %2600 = vmatmul.mubr.msk.f32.vlgmr.msra.gmra.mrb[10].mxu1 %vm825_vm1, %v3204_v58 }
 0xd71   : > { %v2601_v9 = vpop.f32.mrb[10].mxu1 }
 0xd72   : > { %v1954_v10 = vadd.f32 %v2601_v9, %v2429_v8  ;;  %v1948_v11 = vpop.f32.mrb[11].mxu1 }
 0xd73   : > { %v1949_v12 = vadd.f32 %v2429_v8, %v1948_v11 }
 0xd74   : > { %v1960_v13 = vmul.f32 0.70710677, %v1954_v10  ;;  %v1958_v63 = vmul.f32 0.5, %v1954_v10 }
 0xd75   : > { %v1959_v14 = vmul.f32 0.70710677, %v1949_v12  ;;  %v1957_v43 = vmul.f32 0.5, %v1949_v12 }
 0xd76   : > { %v1966_v15 = vand.u32 2147483647, %v1960_v13  ;;  %vm1962_vm6 = vcmp.lt.f32.partialorder %v1960_v13, 0.0 }
 0xd77   : > { %v1965_v16 = vand.u32 2147483647, %v1959_v14  ;;  %vm1961_vm7 = vcmp.lt.f32.partialorder %v1959_v14, 0.0  ;;  %v1964_v50 = vsel %vm1962_vm6, -1.0, %v2857_v56 }
 0xd78   : > { %v1968_v17 = vmul.f32 0.3275911, %v1966_v15  ;;  %v1994_v20 = vsub.f32 0.0, %v1966_v15  ;;  %v1963_v53 = vsel %vm1961_vm7, -1.0, %v2857_v56 }
 0xd79   : > { %v1967_v18 = vmul.f32 0.3275911, %v1965_v16  ;;  %v1993_v21 = vsub.f32 0.0, %v1965_v16 }
 0xd7a   : > { %v1970_v60 = vadd.f32 1.0, %v1968_v17  ;;  %v1996_v22 = vmul.f32 %v1994_v20, %v1966_v15 }
 0xd7b   : > { %v1969_v19 = vadd.f32 1.0, %v1967_v18  ;;  %v1995_v25 = vmul.f32 %v1993_v21, %v1965_v16 }
 0xd7c   : > { %2823 = vrcp.f32 %v1970_v60  ;;  %v1999_v26 = vmul.f32 1.442695, %v1996_v22 }
 0xd7d   : > { %2825 = vrcp.f32 %v1969_v19  ;;  %v1997_v29 = vmul.f32 1.442695, %v1995_v25 }
 0xd7e   : > { %2827 = vpow2.f32 %v1999_v26 }
 0xd7f   : > { %2829 = vpow2.f32 %v1997_v29 }
 0xd86   : > { %v2824_v59 = vpop.eup %2823 }
 0xd87   : > { %v2826_v23 = vpop.eup %2825  ;;  %v1976_v24 = vmul.f32 1.0614054, %v2824_v59 }
 0xd88   : > { %v1975_v42 = vmul.f32 1.0614054, %v2826_v23  ;;  %v2828_v44 = vpop.eup %2827 }
 0xd89   : > { %v1978_v40 = vadd.f32 -1.4531521, %v1976_v24  ;;  %v2830_v46 = vpop.eup %2829  ;;  %v2435_v24 = vld [vmem:[%s729_s20] ss:$0 sm:$0xff] }
 0xd8a   : > { %v1977_v27 = vadd.f32 -1.4531521, %v1975_v42 }
 0xd8b   : > { %v1980_v28 = vmul.f32 %v2824_v59, %v1978_v40  ;;  %v2436_v40 = vld [vmem:[%s732_s16] ss:$0 sm:$0xff] }
 0xd8c   : > { %v1979_v30 = vmul.f32 %v2826_v23, %v1977_v27 }
 0xd8d   : > { %v1982_v37 = vadd.f32 1.4214138, %v1980_v28 }
 0xd8e   : > { %v1981_v35 = vadd.f32 1.4214138, %v1979_v30 }
 0xd8f   : > { %v1984_v31 = vmul.f32 %v2824_v59, %v1982_v37  ;;  %v2151_v37 = vld [vmem:[%s3318_s1] sm:$0xff] (!%p2437_p5) }
 0xd90   : > { %v1983_v32 = vmul.f32 %v2826_v23, %v1981_v35  ;;  %v2152_v35 = vld [vmem:[%s3318_s1 + $0x8] sm:$0xff] (!%p2437_p5) }
 0xd91   : > { %v1986_v33 = vadd.f32 -0.28449672, %v1984_v31  ;;  %v2153_v31 = vld [vmem:[%s3318_s1 + $0x10] sm:$0xff] (!%p2437_p5) }
 0xd92   : > { %v1985_v34 = vadd.f32 -0.28449672, %v1983_v32  ;;  %v2712_v32 = vpack.c.bf16 (!%p2437_p5), %v2152_v35, %v2151_v37 }
 0xd93   : > { %v1988_v36 = vmul.f32 %v2824_v59, %v1986_v33  ;;  %v2154_v33 = vld [vmem:[%s3318_s1 + $0x18] sm:$0xff] (!%p2437_p5) }
 0xd94   : > { %v1987_v38 = vmul.f32 %v2826_v23, %v1985_v34  ;;  %2713 = vmatprep.subr.bf16.mxu0 (!%p2437_p5), %v2712_v32 }
 0xd95   : > { %v1990_v39 = vadd.f32 0.2548296, %v1988_v36  ;;  %v2716_v36 = vpack.c.bf16 (!%p2437_p5), %v2154_v33, %v2153_v31 }
 0xd96   : > { %v1989_v47 = vadd.f32 0.2548296, %v1987_v38 }
 0xd97   : > { %v1992_v41 = vmul.f32 %v2824_v59, %v1990_v39  ;;  %v2438_v39 = vld [vmem:[%s3319_s2] ss:$0 sm:$0xff] (!%p2437_p5) }
 0xd98   : > { %v1991_v45 = vmul.f32 %v2826_v23, %v1989_v47 }
 0xd99   : > { %v2002_v48 = vmul.f32 %v2828_v44, %v1992_v41 }
 0xd9a   : > { %v2001_v49 = vmul.f32 %v2830_v46, %v1991_v45 }
 0xd9b   : > { %v2004_v55 = vsub.f32 1.0, %v2002_v48 }
 0xd9c   : > { %v2003_v51 = vsub.f32 1.0, %v2001_v49 }
 0xd9d   : > { %v2006_v52 = vmul.f32 %v2004_v55, %v1964_v50 }
 0xd9e   : > { %v2005_v57 = vmul.f32 %v2003_v51, %v1963_v53 }
 0xd9f   : > { %v2008_v61 = vadd.f32 1.0, %v2006_v52 }
 0xda0   : > { %v2007_v62 = vadd.f32 1.0, %v2005_v57 }
 0xda1   : > { %v2010_v1 = vmul.f32 %v2008_v61, %v1958_v63 }
 0xda2   : > { %v2009_v0 = vmul.f32 %v2007_v62, %v1957_v43 }
 0xda4   : > { %2618 = vmatprep.mubr.msk.f32.mxu0 %vm2017_vm8, %v2009_v0 }
 0xda5   : > { %2619 = vmatmul.mubr.msk.f32.vlgmr.msra.gmra.mrb[10].mxu0 %vm2017_vm8, %v2010_v1 }
 0xda6   : > { %2715 = vmatpush3.bf16.msra.mxu0 (!%p2437_p5), %v2712_v32 }
 0xda7   : > { %2717 = vmatprep.subr.bf16.mxu0 (!%p2437_p5), %v2716_v36 }
 0xdaa   : > { %2719 = vmatpush3.bf16.msra.mxu0 (!%p2437_p5), %v2716_v36 }
 0xe78   : > { %v2620_v3 = vpop.f32.mrb[10].mxu0 }
 0xe79   : > { %v2096_v4 = vadd.f32 %v2620_v3, %v2432_v2  ;;  %v2090_v5 = vpop.f32.mrb[11].mxu0 }
 0xe7a   : > { %v2091_v6 = vadd.f32 %v2432_v2, %v2090_v5 }
 0xe7b   : > { %v2100_v7 = vadd.f32 %v2096_v4, %v3204_v58 }
 0xe7c   : > { %v2099_v8 = vadd.f32 %v2091_v6, %v3200_v54 }
 0xe7d   : > { %v2104_v9 = vsel %vm825_vm1, %v2100_v7, 0.0 }
 0xe7e   : > { %2105 = vadd.xlane.f32.xlu0 %v2104_v9  ;;  %v2101_v10 = vsel %vm825_vm1, %v2099_v8, 0.0 }
 0xe7f   : > { %2102 = vadd.xlane.f32.xlu1 %v2101_v10 }
 0xf0b   : > { %v2106_v11 = vpop.xlane.xlu0 %2105 }
 0xf0c   : > { %v2108_v12 = vmul.f32 0.03125, %v2106_v11  ;;  %v2103_v13 = vpop.xlane.xlu1 %2102 }
 0xf0d   : > { %v2107_v14 = vmul.f32 0.03125, %v2103_v13 }
 0xf0e   : > { %v2110_v15 = vsub.f32 %v2100_v7, %v2108_v12 }
 0xf0f   : > { %v2109_v16 = vsub.f32 %v2099_v8, %v2107_v14 }
 0xf10   : > { %v2112_v17 = vmul.f32 %v2110_v15, %v2110_v15 }
 0xf11   : > { %v2111_v18 = vmul.f32 %v2109_v16, %v2109_v16 }
 0xf12   : > { %v2116_v60 = vsel %vm825_vm1, %v2112_v17, 0.0 }
 0xf13   : > { %2117 = vadd.xlane.f32.xlu0 %v2116_v60  ;;  %v2113_v54 = vsel %vm825_vm1, %v2111_v18, 0.0 }
 0xf14   : > { %2114 = vadd.xlane.f32.xlu1 %v2113_v54 }
 0xfa0   : > { %v2118_v58 = vpop.xlane.xlu0 %2117 }
 0xfa1   : > { %v2120_v19 = vmul.f32 0.03125, %v2118_v58  ;;  %v2115_v20 = vpop.xlane.xlu1 %2114 }
 0xfa2   : > { %v2119_v21 = vmul.f32 0.03125, %v2115_v20 }
 0xfa3   : > { %v2122_v59 = vadd.f32 1e-12, %v2120_v19 }
 0xfa4   : > { %v2121_v22 = vadd.f32 1e-12, %v2119_v21 }
 0xfa5   : > { %2831 = vrsqrt.f32 %v2122_v59 }
 0xfa6   : > { %2833 = vrsqrt.f32 %v2121_v22 }
 0xfaf   : > { %v2832_v23 = vpop.eup %2831 }
 0xfb0   : > { %v2834_v25 = vpop.eup %2833  ;;  %v2126_v42 = vmul.f32 %v2832_v23, %v2110_v15 }
 0xfb1   : > { %v2125_v26 = vmul.f32 %v2834_v25, %v2109_v16  ;;  %2148 = sbr.rel (%p2437_p5) target bundleno = 4248 (0x1098), region = 100 }
 0xfb2   : > { %v2134_v27 = vmul.f32 %v2435_v24, %v2126_v42 }
 0xfb3   : > { %v2133_v28 = vmul.f32 %v2435_v24, %v2125_v26 }
 0xfb4   : > { %v2142_v29 = vadd.f32 %v2436_v40, %v2134_v27 }
 0xfb5   : > { %v2141_v30 = vadd.f32 %v2436_v40, %v2133_v28 }
 0xfb6   : > { %2144 = vst.msk [vmem:[#allocation2 + $0x8] sm:$0xff] %vm825_vm1, %v2142_v29 }
 0xfb7   : > { %2143 = vst.msk [vmem:[#allocation2] sm:$0xff] %vm825_vm1, %v2141_v30 }
 0xfbd   : > { %v2150_v38 = vld [vmem:[#allocation2 + $0x8] sm:$0xff] }
 0xfbe   : > { %v2149_v34 = vld [vmem:[#allocation2] sm:$0xff] }
 0xfbf   : > { %2629 = vmatprep.mubr.msk.f32.mxu0 %vm825_vm1, %v2149_v34 }
 0xfc0   : > { %2630 = vmatmul.mubr.msk.f32.vlgmr.msra.gmra.mrb[0].mxu0 %vm825_vm1, %v2150_v38 }
0x1093   : > { %v2631_v47 = vpop.f32.mrb[0].mxu0 }
0x1094   : > { %v2240_v41 = vadd.f32 %v2631_v47, %v2438_v39  ;;  %v2234_v44 = vpop.f32.mrb[1].mxu0 }
0x1095   : > { %v2235_v45 = vadd.f32 %v2438_v39, %v2234_v44 }
0x1096   : > { %2245 = vst.msk [vmem:[%s3320_s0 + $0x8] sm:$0xff] %vm2243_vm9, %v2240_v41 }
0x1097   : > { %2244 = vst.msk [vmem:[%s3320_s0] sm:$0xff] %vm2243_vm9, %v2235_v45 }
0x1098 PF: > { %s3321_s24 = sld [smem:[#allocation3_spill]] }
0x109e   : > { %s28_s27 = sadd.s32 1, %s3321_s24  }
0x109f   : > { %p25_p6 = scmp.ge.s32.totalorder %s28_s27, 4  }
0x10a1   :  { %27 = sbr.rel (!%p25_p6) target bundleno = 9 (0x9), region = 159 }

</bundles_post_ra>
